<compile_context>
chip_gen: v7x
topology: tpu7x:2x2x1
jax: 0.10.0
libtpu: 0.0.40
codegen_flags: <defaults>
</compile_context>

<pallas_src>
from functools import partial

import jax
import jax.numpy as jnp
from jax.experimental import pallas as pl
from jax.experimental.pallas import tpu as pltpu


# ------------------------------ small helpers --------------------------------

def _round_up(n, m):
    return ((n + m - 1) // m) * m


def _device_kind():
    try:
        return jax.devices()[0].device_kind.lower()
    except Exception:
        return ""


def _silu_exact(v):
    # exact SiLU: used where the result feeds later matmuls (error would propagate)
    return v * (1.0 / (1.0 + jnp.exp(-v)))


def _silu_approx(v):
    # epilogue SiLU: exp already sits on the EUP; approx reciprocal moves the
    # divide to the EUP slot too (error ~1e-3 abs, does not propagate further).
    return v * pl.reciprocal(1.0 + jnp.exp(-v), approx=True)


# --------------------------------- kernel ------------------------------------

def sppf_kernel(x_ref, w1_ref, s1_ref, b1_ref, w2_ref, s2_ref, b2_ref, o_ref,
                *, H, W, pool_dtype):
    # x_ref : (Bt, C1, H*W)   bf16, lane-dense spatial layout
    # w1_ref: (Cm, C1)        bf16 cv1 1x1 conv weight (out, in), Cm padded to 8
    # s1/b1 : (Cm, 1)         f32 folded BN scale / bias for cv1
    # w2_ref: (4, C2, Cm)     bf16 cv2 weight pre-split over the 4 branches
    # s2/b2 : (C2, 1)         f32 folded BN scale / bias for cv2
    # o_ref : (Bt, C2, H*W)
    HW = H * W
    Bt = x_ref.shape[0]
    Cm = w1_ref.shape[0]

    # ---- masks for the separable 5x5 / stride-1 / pad-2 max pool (hoisted) ---
    lane = jax.lax.broadcasted_iota(jnp.int32, (Cm, HW), 1)
    col = lane % W
    ninf = jnp.array(-jnp.inf, pool_dtype)
    col_ok_p = col < (W - 1)          # value at column+1 stays inside the row
    col_ok_m = col >= 1               # value at column-1 stays inside the row
    row_ok_p = lane < (H - 1) * W     # value at row+1   stays inside the image
    row_ok_m = lane >= W              # value at row-1   stays inside the image

    def _max3(a, sp, sm, ok_p, ok_m):
        # 3-tap max along one image axis: rolls go to the XLU, max/select to the VPU.
        t = jnp.maximum(jnp.where(ok_p, pltpu.roll(a, sp, axis=1), ninf),
                        jnp.where(ok_m, pltpu.roll(a, sm, axis=1), ninf))
        return jnp.maximum(a, t)

    def pool(a):
        # separable 5x5 max pool as a 2-level tree: max3(max3(.)) == 5-tap.
        a = _max3(a, HW - 1, 1, col_ok_p, col_ok_m)   # 3-tap over columns
        a = _max3(a, HW - 1, 1, col_ok_p, col_ok_m)   # -> 5-tap over columns
        a = _max3(a, HW - W, W, row_ok_p, row_ok_m)   # 3-tap over rows
        a = _max3(a, HW - W, W, row_ok_p, row_ok_m)   # -> 5-tap over rows
        return a

    w1 = w1_ref[...]
    s1 = s1_ref[...]
    b1 = b1_ref[...]
    s2 = s2_ref[...]
    b2 = b2_ref[...]

    for b in range(Bt):
        x = x_ref[b]                                               # (C1, HW) bf16

        # ---- cv1: 1x1 conv == channel matmul (bf16 MXU, f32 acc) + BN + SiLU
        h = jnp.dot(w1, x, preferred_element_type=jnp.float32)
        h = _silu_exact(h * s1 + b1)                               # (Cm, HW) f32

        # ---- cv2 accumulation interleaved with the pool chain (no concat) ----
        y = h.astype(pool_dtype)
        o = jnp.dot(w2_ref[0], y.astype(jnp.bfloat16),
                    preferred_element_type=jnp.float32)            # (C2, HW) f32
        for k in (1, 2, 3):
            y = pool(y)                                            # y1 / y2 / y3
            o = o + jnp.dot(w2_ref[k], y.astype(jnp.bfloat16),
                            preferred_element_type=jnp.float32)

        o_ref[b] = _silu_approx(o * s2 + b2).astype(o_ref.dtype)   # lane-dense store


# ----------------------------- wrapper helpers --------------------------------

def _default_batch_tile(N, C1, C2_p, HW, max_tile=8, budget_bytes=4 << 20):
    """Pack several images per grid step when H*W is small (amortize per-step overhead)."""
    per_img = HW * (C1 * 2 + C2_p * 4)          # bf16 input block + f32 output block
    for d in range(min(N, max_tile), 0, -1):
        if N % d == 0 and d * per_img <= budget_bytes:
            return d
    return 1


def _vmem_limit_bytes(Bt, C1, Cm_p, C2_p, HW, pool_dtype, out_dtype, kind):
    """Derive the scoped-VMEM limit from the actual per-step footprint."""
    psz = jnp.dtype(pool_dtype).itemsize
    osz = jnp.dtype(out_dtype).itemsize
    blocks = 2 * Bt * HW * (C1 * 2 + C2_p * osz)                  # double-buffered I/O
    weights = 2 * (Cm_p * C1 * 2 + 4 * C2_p * Cm_p * 2 + (Cm_p + C2_p) * 2 * 4)
    live = HW * (4 * Cm_p * psz + Cm_p * 4 + 2 * C2_p * 4)        # pool temps + f32 acc
    est = blocks + weights + live
    cap = (48 << 20) if "v7" in kind else (100 << 20)             # v7x has only 64 MiB VMEM
    return int(min(cap, max(32 << 20, 2 * est)))


# --------------------------- one-time parameter prep ---------------------------

def prepare_sppf_params(params, *, channel_multiple=8):
    """Fold/pad/split SPPF params once (not per forward call).

    - pads Cm and C2 to a multiple of 8 so (C, H*W) tiles are sublane-dense,
    - pre-splits the cv2 weight over the 4 concat branches -> (4, C2, Cm),
    - casts matmul weights to bf16, keeps BN scale/bias in f32.
    Padded channels are exact zeros end-to-end, so results are unchanged.
    """
    w1, s1, b1, w2, s2, b2 = params
    Cm, C1 = w1.shape
    C2, C4 = w2.shape
    assert C4 == 4 * Cm
    Cm_p = _round_up(Cm, channel_multiple)
    C2_p = _round_up(C2, channel_multiple)

    w1p = jnp.zeros((Cm_p, C1), jnp.float32).at[:Cm].set(w1)
    s1p = jnp.ones((Cm_p,), jnp.float32).at[:Cm].set(s1)
    b1p = jnp.zeros((Cm_p,), jnp.float32).at[:Cm].set(b1)

    w2_split = jnp.zeros((4, C2_p, Cm_p), jnp.float32)
    w2_split = w2_split.at[:, :C2, :Cm].set(w2.reshape(C2, 4, Cm).transpose(1, 0, 2))
    s2p = jnp.ones((C2_p,), jnp.float32).at[:C2].set(s2)
    b2p = jnp.zeros((C2_p,), jnp.float32).at[:C2].set(b2)

    return {
        "w1": w1p.astype(jnp.bfloat16),
        "s1": s1p.reshape(Cm_p, 1),
        "b1": b1p.reshape(Cm_p, 1),
        "w2": w2_split.astype(jnp.bfloat16),
        "s2": s2p.reshape(C2_p, 1),
        "b2": b2p.reshape(C2_p, 1),
        "c2": C2,
        "c2_padded": C2_p,
        "cm_padded": Cm_p,
    }


# --------------------------------- forward ------------------------------------

def sppf_forward(x_nchw, prepped, *, batch_tile=None, pool_dtype=None,
                 out_dtype=jnp.float32):
    """SPPF forward. x_nchw: (N, C1, H, W). Returns (N, C2, H, W) in out_dtype."""
    N, C1, H, W = x_nchw.shape
    HW = H * W
    Cm_p = prepped["cm_padded"]
    C2_p = prepped["c2_padded"]
    C2 = prepped["c2"]

    kind = _device_kind()
    if pool_dtype is None:
        # bf16 pool only where the VPU is natively bf16 (v6e / v7x); f32 on v5e/older.
        pool_dtype = jnp.bfloat16 if ("v6" in kind or "v7" in kind) else jnp.float32
    if batch_tile is None:
        batch_tile = _default_batch_tile(N, C1, C2_p, HW)
    assert N % batch_tile == 0

    # NCHW is row-major -> flattening (H, W) -> HW is a free reshape; bf16 halves DMA.
    x = x_nchw.astype(jnp.bfloat16).reshape(N, C1, HW)

    # TODO(synk): add a halo'd (+-6 rows) spatial grid axis for production-sized
    # feature maps (v7x 64 MiB VMEM / dual-TC at N=1); whole-image blocks are fine here.
    out = pl.pallas_call(
        partial(sppf_kernel, H=H, W=W, pool_dtype=pool_dtype),
        out_shape=jax.ShapeDtypeStruct((N, C2_p, HW), out_dtype),
        grid_spec=pltpu.PrefetchScalarGridSpec(
            num_scalar_prefetch=0,
            grid=(N // batch_tile,),
            in_specs=[
                pl.BlockSpec((batch_tile, C1, HW), lambda b: (b, 0, 0)),
                pl.BlockSpec((Cm_p, C1), lambda b: (0, 0)),
                pl.BlockSpec((Cm_p, 1), lambda b: (0, 0)),
                pl.BlockSpec((Cm_p, 1), lambda b: (0, 0)),
                pl.BlockSpec((4, C2_p, Cm_p), lambda b: (0, 0, 0)),
                pl.BlockSpec((C2_p, 1), lambda b: (0, 0)),
                pl.BlockSpec((C2_p, 1), lambda b: (0, 0)),
            ],
            out_specs=pl.BlockSpec((batch_tile, C2_p, HW), lambda b: (b, 0, 0)),
        ),
        compiler_params=pltpu.CompilerParams(
            dimension_semantics=("parallel",),
            vmem_limit_bytes=_vmem_limit_bytes(batch_tile, C1, Cm_p, C2_p, HW,
                                               pool_dtype, out_dtype, kind),
        ),
    )(x, prepped["w1"], prepped["s1"], prepped["b1"],
      prepped["w2"], prepped["s2"], prepped["b2"])

    return out[:, :C2, :].reshape(N, C2, H, W)


# --------------------------- parameter construction ---------------------------

def make_sppf_params(key, c1, c2):
    """Synthetic weights; BatchNorm (eval) folded into per-channel scale/bias."""
    c_ = c1 // 2
    eps = 1e-5
    ks = jax.random.split(key, 10)

    # cv1: conv weight (c_, c1, 1, 1) -> (c_, c1)
    w1 = jax.random.normal(ks[0], (c_, c1), jnp.float32) * 0.3
    g1 = 0.5 + jax.random.uniform(ks[1], (c_,), jnp.float32)
    be1 = jax.random.normal(ks[2], (c_,), jnp.float32) * 0.1
    mu1 = jax.random.normal(ks[3], (c_,), jnp.float32) * 0.1
    var1 = 0.5 + jax.random.uniform(ks[4], (c_,), jnp.float32)
    s1 = g1 / jnp.sqrt(var1 + eps)
    b1 = be1 - mu1 * s1

    # cv2: conv weight (c2, 4*c_, 1, 1) -> (c2, 4*c_)
    w2 = jax.random.normal(ks[5], (c2, 4 * c_), jnp.float32) * 0.3
    g2 = 0.5 + jax.random.uniform(ks[6], (c2,), jnp.float32)
    be2 = jax.random.normal(ks[7], (c2,), jnp.float32) * 0.1
    mu2 = jax.random.normal(ks[8], (c2,), jnp.float32) * 0.1
    var2 = 0.5 + jax.random.uniform(ks[9], (c2,), jnp.float32)
    s2 = g2 / jnp.sqrt(var2 + eps)
    b2 = be2 - mu2 * s2

    return (w1, s1, b1, w2, s2, b2)


# ------------------------------ pure-JAX reference ----------------------------

def sppf_ref(x_nchw, params, *, pool_dtype=jnp.float32):
    """Reference matching the kernel's quantization (bf16 matmul operands, f32 acc,
    pool in pool_dtype). Max is monotone, so pooling in bf16 equals pooling f32
    values that were rounded to bf16 — identical to the kernel's pool output."""
    w1, s1, b1, w2, s2, b2 = params
    md = jnp.bfloat16
    x = x_nchw.astype(md)

    def silu(v):
        return v * (1.0 / (1.0 + jnp.exp(-v)))

    z1 = jnp.einsum('oc,nchw->nohw', w1.astype(md), x,
                    preferred_element_type=jnp.float32)
    h = silu(z1 * s1[None, :, None, None] + b1[None, :, None, None])
    h = h.astype(pool_dtype)

    def mp(a):
        return jax.lax.reduce_window(
            a, jnp.array(-jnp.inf, a.dtype), jax.lax.max,
            (1, 1, 5, 5), (1, 1, 1, 1),
            [(0, 0), (0, 0), (2, 2), (2, 2)])

    y1 = mp(h)
    y2 = mp(y1)
    y3 = mp(y2)
    cat = jnp.concatenate([h, y1, y2, y3], axis=1).astype(md)
    z2 = jnp.einsum('oc,nchw->nohw', w2.astype(md), cat,
                    preferred_element_type=jnp.float32)
    return silu(z2 * s2[None, :, None, None] + b2[None, :, None, None])


# ----------------------------------- main --------------------------------------

if __name__ == "__main__":
    key = jax.random.PRNGKey(0)
    kx, kp = jax.random.split(key)

    N, C1, H, W = 2, 8, 16, 16
    C2 = 8
    x = jax.random.normal(kx, (N, C1, H, W), jnp.float32)
    raw_params = make_sppf_params(kp, C1, C2)
    prepped = prepare_sppf_params(raw_params)

    kind = _device_kind()
    pool_dtype = jnp.bfloat16 if ("v6" in kind or "v7" in kind) else jnp.float32

    out = jax.block_until_ready(sppf_forward(x, prepped, pool_dtype=pool_dtype))
    ref = jax.block_until_ready(sppf_ref(x, raw_params, pool_dtype=pool_dtype))

    assert out.shape == (N, C2, H, W)
    max_diff = float(jnp.max(jnp.abs(out - ref)))
    # tolerance covers the EUP approx-reciprocal in the final SiLU and f32
    # accumulation-order differences (matmul operands are bf16 in both paths).
    assert jnp.allclose(out, ref, atol=2e-2, rtol=2e-2), f"max abs diff {max_diff}"

    print("KERNEL_OK")
</pallas_src>

<mosaic_0001>
module attributes {stable_mosaic.version = 11 : i64} {
  func.func @sppf_kernel(%arg0: i32, %arg1: memref<2x8x256xbf16, #tpu.memory_space<vmem>>, %arg2: memref<8x8xbf16, #tpu.memory_space<vmem>>, %arg3: memref<8x1xf32, #tpu.memory_space<vmem>>, %arg4: memref<8x1xf32, #tpu.memory_space<vmem>>, %arg5: memref<4x8x8xbf16, #tpu.memory_space<vmem>>, %arg6: memref<8x1xf32, #tpu.memory_space<vmem>>, %arg7: memref<8x1xf32, #tpu.memory_space<vmem>>, %arg8: memref<2x8x256xf32, #tpu.memory_space<vmem>>) attributes {dimension_semantics = [#tpu.dimension_semantics<parallel>], iteration_bounds = array<i64: 1>, scalar_prefetch = 0 : i64, scratch_operands = 0 : i64, tpu.core_type = #tpu.core_type<tc>, window_params = [{transform_indices = @transform_0, window_bounds = array<i64: 2, 8, 256>}, {pipeline_mode = #tpu.pipeline_mode<synchronous>, transform_indices = @transform_1, window_bounds = array<i64: 8, 8>}, {pipeline_mode = #tpu.pipeline_mode<synchronous>, transform_indices = @transform_2, window_bounds = array<i64: 8, 1>}, {pipeline_mode = #tpu.pipeline_mode<synchronous>, transform_indices = @transform_3, window_bounds = array<i64: 8, 1>}, {pipeline_mode = #tpu.pipeline_mode<synchronous>, transform_indices = @transform_4, window_bounds = array<i64: 4, 8, 8>}, {pipeline_mode = #tpu.pipeline_mode<synchronous>, transform_indices = @transform_5, window_bounds = array<i64: 8, 1>}, {pipeline_mode = #tpu.pipeline_mode<synchronous>, transform_indices = @transform_6, window_bounds = array<i64: 8, 1>}, {transform_indices = @transform_7, window_bounds = array<i64: 2, 8, 256>}]} {
    %0 = tpu.iota {dimensions = array<i32: 1>} : vector<8x256xi32>
    %c16_i32 = arith.constant 16 : i32
    %c0_i32 = arith.constant 0 : i32
    %1 = arith.cmpi eq, %c16_i32, %c0_i32 : i32
    %c1_i32 = arith.constant 1 : i32
    %2 = arith.select %1, %c1_i32, %c16_i32 : i32
    %3 = vector.broadcast %2 : i32 to vector<8x256xi32>
    %4 = arith.remsi %0, %3 : vector<8x256xi32>
    %c0_i32_0 = arith.constant 0 : i32
    %5 = vector.broadcast %c0_i32_0 : i32 to vector<8x256xi32>
    %6 = arith.cmpi ne, %4, %5 : vector<8x256xi32>
    %c0_i32_1 = arith.constant 0 : i32
    %7 = vector.broadcast %c0_i32_1 : i32 to vector<8x256xi32>
    %8 = arith.cmpi slt, %4, %7 : vector<8x256xi32>
    %c0_i32_2 = arith.constant 0 : i32
    %9 = arith.cmpi slt, %2, %c0_i32_2 : i32
    %10 = vector.broadcast %9 : i1 to vector<8x256xi1>
    %11 = vector.broadcast %10 : vector<8x256xi1> to vector<8x256xi1>
    %12 = arith.xori %8, %11 : vector<8x256xi1>
    %13 = arith.andi %12, %6 : vector<8x256xi1>
    %14 = vector.broadcast %2 : i32 to vector<8x256xi32>
    %15 = arith.addi %4, %14 : vector<8x256xi32>
    %16 = arith.select %13, %15, %4 : vector<8x256xi1>, vector<8x256xi32>
    %c15_i32 = arith.constant 15 : i32
    %17 = vector.broadcast %c15_i32 : i32 to vector<8x256xi32>
    %18 = arith.cmpi slt, %16, %17 : vector<8x256xi32>
    %c1_i32_3 = arith.constant 1 : i32
    %19 = vector.broadcast %c1_i32_3 : i32 to vector<8x256xi32>
    %20 = arith.cmpi sge, %16, %19 : vector<8x256xi32>
    %c240_i32 = arith.constant 240 : i32
    %21 = vector.broadcast %c240_i32 : i32 to vector<8x256xi32>
    %22 = arith.cmpi slt, %0, %21 : vector<8x256xi32>
    %c16_i32_4 = arith.constant 16 : i32
    %23 = vector.broadcast %c16_i32_4 : i32 to vector<8x256xi32>
    %24 = arith.cmpi sge, %0, %23 : vector<8x256xi32>
    %c0 = arith.constant 0 : index
    %c0_5 = arith.constant 0 : index
    %25 = vector.load %arg2[%c0, %c0_5] : memref<8x8xbf16, #tpu.memory_space<vmem>>, vector<8x8xbf16>
    %c0_6 = arith.constant 0 : index
    %c0_7 = arith.constant 0 : index
    %26 = vector.load %arg3[%c0_6, %c0_7] : memref<8x1xf32, #tpu.memory_space<vmem>>, vector<8x1xf32>
    %c0_8 = arith.constant 0 : index
    %c0_9 = arith.constant 0 : index
    %27 = vector.load %arg4[%c0_8, %c0_9] : memref<8x1xf32, #tpu.memory_space<vmem>>, vector<8x1xf32>
    %c0_10 = arith.constant 0 : index
    %c0_11 = arith.constant 0 : index
    %28 = vector.load %arg6[%c0_10, %c0_11] : memref<8x1xf32, #tpu.memory_space<vmem>>, vector<8x1xf32>
    %c0_12 = arith.constant 0 : index
    %c0_13 = arith.constant 0 : index
    %29 = vector.load %arg7[%c0_12, %c0_13] : memref<8x1xf32, #tpu.memory_space<vmem>>, vector<8x1xf32>
    %c0_14 = arith.constant 0 : index
    %c0_15 = arith.constant 0 : index
    %c0_16 = arith.constant 0 : index
    %30 = vector.load %arg1[%c0_14, %c0_15, %c0_16] : memref<2x8x256xbf16, #tpu.memory_space<vmem>>, vector<1x8x256xbf16>
    %31 = vector.shape_cast %30 : vector<1x8x256xbf16> to vector<8x256xbf16>
    %cst = arith.constant dense<0.000000e+00> : vector<8x256xf32>
    %32 = tpu.matmul %25, %31, %cst {dimension_numbers = #tpu.dot_dimension_numbers<[1], [0], [0], [1], [0, 0, 1, 1], [], []>} : vector<8x8xbf16>, vector<8x256xbf16>, vector<8x256xf32> -> vector<8x256xf32>
    %33 = vector.broadcast %26 : vector<8x1xf32> to vector<8x256xf32>
    %34 = arith.mulf %32, %33 : vector<8x256xf32>
    %35 = vector.broadcast %27 : vector<8x1xf32> to vector<8x256xf32>
    %36 = arith.addf %34, %35 : vector<8x256xf32>
    %cst_17 = arith.constant 0.000000e+00 : f32
    %37 = vector.broadcast %cst_17 : f32 to vector<8x256xf32>
    %38 = arith.subf %37, %36 : vector<8x256xf32>
    %39 = math.exp %38 : vector<8x256xf32>
    %cst_18 = arith.constant 1.000000e+00 : f32
    %40 = vector.broadcast %cst_18 : f32 to vector<8x256xf32>
    %41 = arith.addf %40, %39 : vector<8x256xf32>
    %cst_19 = arith.constant 1.000000e+00 : f32
    %42 = vector.broadcast %cst_19 : f32 to vector<8x256xf32>
    %43 = arith.divf %42, %41 : vector<8x256xf32>
    %44 = arith.mulf %36, %43 : vector<8x256xf32>
    %c0_20 = arith.constant 0 : index
    %c0_21 = arith.constant 0 : index
    %c0_22 = arith.constant 0 : index
    %45 = vector.load %arg5[%c0_20, %c0_21, %c0_22] : memref<4x8x8xbf16, #tpu.memory_space<vmem>>, vector<1x8x8xbf16>
    %46 = vector.shape_cast %45 : vector<1x8x8xbf16> to vector<8x8xbf16>
    %47 = arith.truncf %44 : vector<8x256xf32> to vector<8x256xbf16>
    %cst_23 = arith.constant dense<0.000000e+00> : vector<8x256xf32>
    %48 = tpu.matmul %46, %47, %cst_23 {dimension_numbers = #tpu.dot_dimension_numbers<[1], [0], [0], [1], [0, 0, 1, 1], [], []>} : vector<8x8xbf16>, vector<8x256xbf16>, vector<8x256xf32> -> vector<8x256xf32>
    %c255_i32 = arith.constant 255 : i32
    %49 = tpu.dynamic_rotate %44 by %c255_i32 dim 1 : vector<8x256xf32>, i32 -> vector<8x256xf32>
    %cst_24 = arith.constant 0xFF800000 : f32
    %50 = vector.broadcast %cst_24 : f32 to vector<8x256xf32>
    %51 = arith.select %18, %49, %50 : vector<8x256xi1>, vector<8x256xf32>
    %c1_i32_25 = arith.constant 1 : i32
    %52 = tpu.dynamic_rotate %44 by %c1_i32_25 dim 1 : vector<8x256xf32>, i32 -> vector<8x256xf32>
    %cst_26 = arith.constant 0xFF800000 : f32
    %53 = vector.broadcast %cst_26 : f32 to vector<8x256xf32>
    %54 = arith.select %20, %52, %53 : vector<8x256xi1>, vector<8x256xf32>
    %55 = arith.maximumf %51, %54 : vector<8x256xf32>
    %56 = arith.maximumf %44, %55 : vector<8x256xf32>
    %c255_i32_27 = arith.constant 255 : i32
    %57 = tpu.dynamic_rotate %56 by %c255_i32_27 dim 1 : vector<8x256xf32>, i32 -> vector<8x256xf32>
    %cst_28 = arith.constant 0xFF800000 : f32
    %58 = vector.broadcast %cst_28 : f32 to vector<8x256xf32>
    %59 = arith.select %18, %57, %58 : vector<8x256xi1>, vector<8x256xf32>
    %c1_i32_29 = arith.constant 1 : i32
    %60 = tpu.dynamic_rotate %56 by %c1_i32_29 dim 1 : vector<8x256xf32>, i32 -> vector<8x256xf32>
    %cst_30 = arith.constant 0xFF800000 : f32
    %61 = vector.broadcast %cst_30 : f32 to vector<8x256xf32>
    %62 = arith.select %20, %60, %61 : vector<8x256xi1>, vector<8x256xf32>
    %63 = arith.maximumf %59, %62 : vector<8x256xf32>
    %64 = arith.maximumf %56, %63 : vector<8x256xf32>
    %c240_i32_31 = arith.constant 240 : i32
    %65 = tpu.dynamic_rotate %64 by %c240_i32_31 dim 1 : vector<8x256xf32>, i32 -> vector<8x256xf32>
    %cst_32 = arith.constant 0xFF800000 : f32
    %66 = vector.broadcast %cst_32 : f32 to vector<8x256xf32>
    %67 = arith.select %22, %65, %66 : vector<8x256xi1>, vector<8x256xf32>
    %c16_i32_33 = arith.constant 16 : i32
    %68 = tpu.dynamic_rotate %64 by %c16_i32_33 dim 1 : vector<8x256xf32>, i32 -> vector<8x256xf32>
    %cst_34 = arith.constant 0xFF800000 : f32
    %69 = vector.broadcast %cst_34 : f32 to vector<8x256xf32>
    %70 = arith.select %24, %68, %69 : vector<8x256xi1>, vector<8x256xf32>
    %71 = arith.maximumf %67, %70 : vector<8x256xf32>
    %72 = arith.maximumf %64, %71 : vector<8x256xf32>
    %c240_i32_35 = arith.constant 240 : i32
    %73 = tpu.dynamic_rotate %72 by %c240_i32_35 dim 1 : vector<8x256xf32>, i32 -> vector<8x256xf32>
    %cst_36 = arith.constant 0xFF800000 : f32
    %74 = vector.broadcast %cst_36 : f32 to vector<8x256xf32>
    %75 = arith.select %22, %73, %74 : vector<8x256xi1>, vector<8x256xf32>
    %c16_i32_37 = arith.constant 16 : i32
    %76 = tpu.dynamic_rotate %72 by %c16_i32_37 dim 1 : vector<8x256xf32>, i32 -> vector<8x256xf32>
    %cst_38 = arith.constant 0xFF800000 : f32
    %77 = vector.broadcast %cst_38 : f32 to vector<8x256xf32>
    %78 = arith.select %24, %76, %77 : vector<8x256xi1>, vector<8x256xf32>
    %79 = arith.maximumf %75, %78 : vector<8x256xf32>
    %80 = arith.maximumf %72, %79 : vector<8x256xf32>
    %c1 = arith.constant 1 : index
    %c0_39 = arith.constant 0 : index
    %c0_40 = arith.constant 0 : index
    %81 = vector.load %arg5[%c1, %c0_39, %c0_40] : memref<4x8x8xbf16, #tpu.memory_space<vmem>>, vector<1x8x8xbf16>
    %82 = vector.shape_cast %81 : vector<1x8x8xbf16> to vector<8x8xbf16>
    %83 = arith.truncf %80 : vector<8x256xf32> to vector<8x256xbf16>
    %cst_41 = arith.constant dense<0.000000e+00> : vector<8x256xf32>
    %84 = tpu.matmul %82, %83, %cst_41 {dimension_numbers = #tpu.dot_dimension_numbers<[1], [0], [0], [1], [0, 0, 1, 1], [], []>} : vector<8x8xbf16>, vector<8x256xbf16>, vector<8x256xf32> -> vector<8x256xf32>
    %85 = arith.addf %48, %84 : vector<8x256xf32>
    %c255_i32_42 = arith.constant 255 : i32
    %86 = tpu.dynamic_rotate %80 by %c255_i32_42 dim 1 : vector<8x256xf32>, i32 -> vector<8x256xf32>
    %cst_43 = arith.constant 0xFF800000 : f32
    %87 = vector.broadcast %cst_43 : f32 to vector<8x256xf32>
    %88 = arith.select %18, %86, %87 : vector<8x256xi1>, vector<8x256xf32>
    %c1_i32_44 = arith.constant 1 : i32
    %89 = tpu.dynamic_rotate %80 by %c1_i32_44 dim 1 : vector<8x256xf32>, i32 -> vector<8x256xf32>
    %cst_45 = arith.constant 0xFF800000 : f32
    %90 = vector.broadcast %cst_45 : f32 to vector<8x256xf32>
    %91 = arith.select %20, %89, %90 : vector<8x256xi1>, vector<8x256xf32>
    %92 = arith.maximumf %88, %91 : vector<8x256xf32>
    %93 = arith.maximumf %80, %92 : vector<8x256xf32>
    %c255_i32_46 = arith.constant 255 : i32
    %94 = tpu.dynamic_rotate %93 by %c255_i32_46 dim 1 : vector<8x256xf32>, i32 -> vector<8x256xf32>
    %cst_47 = arith.constant 0xFF800000 : f32
    %95 = vector.broadcast %cst_47 : f32 to vector<8x256xf32>
    %96 = arith.select %18, %94, %95 : vector<8x256xi1>, vector<8x256xf32>
    %c1_i32_48 = arith.constant 1 : i32
    %97 = tpu.dynamic_rotate %93 by %c1_i32_48 dim 1 : vector<8x256xf32>, i32 -> vector<8x256xf32>
    %cst_49 = arith.constant 0xFF800000 : f32
    %98 = vector.broadcast %cst_49 : f32 to vector<8x256xf32>
    %99 = arith.select %20, %97, %98 : vector<8x256xi1>, vector<8x256xf32>
    %100 = arith.maximumf %96, %99 : vector<8x256xf32>
    %101 = arith.maximumf %93, %100 : vector<8x256xf32>
    %c240_i32_50 = arith.constant 240 : i32
    %102 = tpu.dynamic_rotate %101 by %c240_i32_50 dim 1 : vector<8x256xf32>, i32 -> vector<8x256xf32>
    %cst_51 = arith.constant 0xFF800000 : f32
    %103 = vector.broadcast %cst_51 : f32 to vector<8x256xf32>
    %104 = arith.select %22, %102, %103 : vector<8x256xi1>, vector<8x256xf32>
    %c16_i32_52 = arith.constant 16 : i32
    %105 = tpu.dynamic_rotate %101 by %c16_i32_52 dim 1 : vector<8x256xf32>, i32 -> vector<8x256xf32>
    %cst_53 = arith.constant 0xFF800000 : f32
    %106 = vector.broadcast %cst_53 : f32 to vector<8x256xf32>
    %107 = arith.select %24, %105, %106 : vector<8x256xi1>, vector<8x256xf32>
    %108 = arith.maximumf %104, %107 : vector<8x256xf32>
    %109 = arith.maximumf %101, %108 : vector<8x256xf32>
    %c240_i32_54 = arith.constant 240 : i32
    %110 = tpu.dynamic_rotate %109 by %c240_i32_54 dim 1 : vector<8x256xf32>, i32 -> vector<8x256xf32>
    %cst_55 = arith.constant 0xFF800000 : f32
    %111 = vector.broadcast %cst_55 : f32 to vector<8x256xf32>
    %112 = arith.select %22, %110, %111 : vector<8x256xi1>, vector<8x256xf32>
    %c16_i32_56 = arith.constant 16 : i32
    %113 = tpu.dynamic_rotate %109 by %c16_i32_56 dim 1 : vector<8x256xf32>, i32 -> vector<8x256xf32>
    %cst_57 = arith.constant 0xFF800000 : f32
    %114 = vector.broadcast %cst_57 : f32 to vector<8x256xf32>
    %115 = arith.select %24, %113, %114 : vector<8x256xi1>, vector<8x256xf32>
    %116 = arith.maximumf %112, %115 : vector<8x256xf32>
    %117 = arith.maximumf %109, %116 : vector<8x256xf32>
    %c2 = arith.constant 2 : index
    %c0_58 = arith.constant 0 : index
    %c0_59 = arith.constant 0 : index
    %118 = vector.load %arg5[%c2, %c0_58, %c0_59] : memref<4x8x8xbf16, #tpu.memory_space<vmem>>, vector<1x8x8xbf16>
    %119 = vector.shape_cast %118 : vector<1x8x8xbf16> to vector<8x8xbf16>
    %120 = arith.truncf %117 : vector<8x256xf32> to vector<8x256xbf16>
    %cst_60 = arith.constant dense<0.000000e+00> : vector<8x256xf32>
    %121 = tpu.matmul %119, %120, %cst_60 {dimension_numbers = #tpu.dot_dimension_numbers<[1], [0], [0], [1], [0, 0, 1, 1], [], []>} : vector<8x8xbf16>, vector<8x256xbf16>, vector<8x256xf32> -> vector<8x256xf32>
    %122 = arith.addf %85, %121 : vector<8x256xf32>
    %c255_i32_61 = arith.constant 255 : i32
    %123 = tpu.dynamic_rotate %117 by %c255_i32_61 dim 1 : vector<8x256xf32>, i32 -> vector<8x256xf32>
    %cst_62 = arith.constant 0xFF800000 : f32
    %124 = vector.broadcast %cst_62 : f32 to vector<8x256xf32>
    %125 = arith.select %18, %123, %124 : vector<8x256xi1>, vector<8x256xf32>
    %c1_i32_63 = arith.constant 1 : i32
    %126 = tpu.dynamic_rotate %117 by %c1_i32_63 dim 1 : vector<8x256xf32>, i32 -> vector<8x256xf32>
    %cst_64 = arith.constant 0xFF800000 : f32
    %127 = vector.broadcast %cst_64 : f32 to vector<8x256xf32>
    %128 = arith.select %20, %126, %127 : vector<8x256xi1>, vector<8x256xf32>
    %129 = arith.maximumf %125, %128 : vector<8x256xf32>
    %130 = arith.maximumf %117, %129 : vector<8x256xf32>
    %c255_i32_65 = arith.constant 255 : i32
    %131 = tpu.dynamic_rotate %130 by %c255_i32_65 dim 1 : vector<8x256xf32>, i32 -> vector<8x256xf32>
    %cst_66 = arith.constant 0xFF800000 : f32
    %132 = vector.broadcast %cst_66 : f32 to vector<8x256xf32>
    %133 = arith.select %18, %131, %132 : vector<8x256xi1>, vector<8x256xf32>
    %c1_i32_67 = arith.constant 1 : i32
    %134 = tpu.dynamic_rotate %130 by %c1_i32_67 dim 1 : vector<8x256xf32>, i32 -> vector<8x256xf32>
    %cst_68 = arith.constant 0xFF800000 : f32
    %135 = vector.broadcast %cst_68 : f32 to vector<8x256xf32>
    %136 = arith.select %20, %134, %135 : vector<8x256xi1>, vector<8x256xf32>
    %137 = arith.maximumf %133, %136 : vector<8x256xf32>
    %138 = arith.maximumf %130, %137 : vector<8x256xf32>
    %c240_i32_69 = arith.constant 240 : i32
    %139 = tpu.dynamic_rotate %138 by %c240_i32_69 dim 1 : vector<8x256xf32>, i32 -> vector<8x256xf32>
    %cst_70 = arith.constant 0xFF800000 : f32
    %140 = vector.broadcast %cst_70 : f32 to vector<8x256xf32>
    %141 = arith.select %22, %139, %140 : vector<8x256xi1>, vector<8x256xf32>
    %c16_i32_71 = arith.constant 16 : i32
    %142 = tpu.dynamic_rotate %138 by %c16_i32_71 dim 1 : vector<8x256xf32>, i32 -> vector<8x256xf32>
    %cst_72 = arith.constant 0xFF800000 : f32
    %143 = vector.broadcast %cst_72 : f32 to vector<8x256xf32>
    %144 = arith.select %24, %142, %143 : vector<8x256xi1>, vector<8x256xf32>
    %145 = arith.maximumf %141, %144 : vector<8x256xf32>
    %146 = arith.maximumf %138, %145 : vector<8x256xf32>
    %c240_i32_73 = arith.constant 240 : i32
    %147 = tpu.dynamic_rotate %146 by %c240_i32_73 dim 1 : vector<8x256xf32>, i32 -> vector<8x256xf32>
    %cst_74 = arith.constant 0xFF800000 : f32
    %148 = vector.broadcast %cst_74 : f32 to vector<8x256xf32>
    %149 = arith.select %22, %147, %148 : vector<8x256xi1>, vector<8x256xf32>
    %c16_i32_75 = arith.constant 16 : i32
    %150 = tpu.dynamic_rotate %146 by %c16_i32_75 dim 1 : vector<8x256xf32>, i32 -> vector<8x256xf32>
    %cst_76 = arith.constant 0xFF800000 : f32
    %151 = vector.broadcast %cst_76 : f32 to vector<8x256xf32>
    %152 = arith.select %24, %150, %151 : vector<8x256xi1>, vector<8x256xf32>
    %153 = arith.maximumf %149, %152 : vector<8x256xf32>
    %154 = arith.maximumf %146, %153 : vector<8x256xf32>
    %c3 = arith.constant 3 : index
    %c0_77 = arith.constant 0 : index
    %c0_78 = arith.constant 0 : index
    %155 = vector.load %arg5[%c3, %c0_77, %c0_78] : memref<4x8x8xbf16, #tpu.memory_space<vmem>>, vector<1x8x8xbf16>
    %156 = vector.shape_cast %155 : vector<1x8x8xbf16> to vector<8x8xbf16>
    %157 = arith.truncf %154 : vector<8x256xf32> to vector<8x256xbf16>
    %cst_79 = arith.constant dense<0.000000e+00> : vector<8x256xf32>
    %158 = tpu.matmul %156, %157, %cst_79 {dimension_numbers = #tpu.dot_dimension_numbers<[1], [0], [0], [1], [0, 0, 1, 1], [], []>} : vector<8x8xbf16>, vector<8x256xbf16>, vector<8x256xf32> -> vector<8x256xf32>
    %159 = arith.addf %122, %158 : vector<8x256xf32>
    %160 = vector.broadcast %28 : vector<8x1xf32> to vector<8x256xf32>
    %161 = arith.mulf %159, %160 : vector<8x256xf32>
    %162 = vector.broadcast %29 : vector<8x1xf32> to vector<8x256xf32>
    %163 = arith.addf %161, %162 : vector<8x256xf32>
    %cst_80 = arith.constant 0.000000e+00 : f32
    %164 = vector.broadcast %cst_80 : f32 to vector<8x256xf32>
    %165 = arith.subf %164, %163 : vector<8x256xf32>
    %166 = math.exp %165 : vector<8x256xf32>
    %cst_81 = arith.constant 1.000000e+00 : f32
    %167 = vector.broadcast %cst_81 : f32 to vector<8x256xf32>
    %168 = arith.addf %167, %166 : vector<8x256xf32>
    %169 = tpu.reciprocal %168 {approx = true} : vector<8x256xf32> -> vector<8x256xf32>
    %170 = arith.mulf %163, %169 : vector<8x256xf32>
    %c0_82 = arith.constant 0 : index
    %c0_83 = arith.constant 0 : index
    %c0_84 = arith.constant 0 : index
    %171 = vector.load %arg8[%c0_82, %c0_83, %c0_84] : memref<2x8x256xf32, #tpu.memory_space<vmem>>, vector<1x8x256xf32>
    %172 = vector.shape_cast %171 : vector<1x8x256xf32> to vector<8x256xf32>
    %173 = vector.shape_cast %170 : vector<8x256xf32> to vector<1x8x256xf32>
    tpu.vector_store %arg8[%c0_82, %c0_83, %c0_84], %173 {strides = array<i32>} : memref<2x8x256xf32, #tpu.memory_space<vmem>>, vector<1x8x256xf32>,
    %c1_85 = arith.constant 1 : index
    %c0_86 = arith.constant 0 : index
    %c0_87 = arith.constant 0 : index
    %174 = vector.load %arg1[%c1_85, %c0_86, %c0_87] : memref<2x8x256xbf16, #tpu.memory_space<vmem>>, vector<1x8x256xbf16>
    %175 = vector.shape_cast %174 : vector<1x8x256xbf16> to vector<8x256xbf16>
    %cst_88 = arith.constant dense<0.000000e+00> : vector<8x256xf32>
    %176 = tpu.matmul %25, %175, %cst_88 {dimension_numbers = #tpu.dot_dimension_numbers<[1], [0], [0], [1], [0, 0, 1, 1], [], []>} : vector<8x8xbf16>, vector<8x256xbf16>, vector<8x256xf32> -> vector<8x256xf32>
    %177 = vector.broadcast %26 : vector<8x1xf32> to vector<8x256xf32>
    %178 = arith.mulf %176, %177 : vector<8x256xf32>
    %179 = vector.broadcast %27 : vector<8x1xf32> to vector<8x256xf32>
    %180 = arith.addf %178, %179 : vector<8x256xf32>
    %cst_89 = arith.constant 0.000000e+00 : f32
    %181 = vector.broadcast %cst_89 : f32 to vector<8x256xf32>
    %182 = arith.subf %181, %180 : vector<8x256xf32>
    %183 = math.exp %182 : vector<8x256xf32>
    %cst_90 = arith.constant 1.000000e+00 : f32
    %184 = vector.broadcast %cst_90 : f32 to vector<8x256xf32>
    %185 = arith.addf %184, %183 : vector<8x256xf32>
    %cst_91 = arith.constant 1.000000e+00 : f32
    %186 = vector.broadcast %cst_91 : f32 to vector<8x256xf32>
    %187 = arith.divf %186, %185 : vector<8x256xf32>
    %188 = arith.mulf %180, %187 : vector<8x256xf32>
    %c0_92 = arith.constant 0 : index
    %c0_93 = arith.constant 0 : index
    %c0_94 = arith.constant 0 : index
    %189 = vector.load %arg5[%c0_92, %c0_93, %c0_94] : memref<4x8x8xbf16, #tpu.memory_space<vmem>>, vector<1x8x8xbf16>
    %190 = vector.shape_cast %189 : vector<1x8x8xbf16> to vector<8x8xbf16>
    %191 = arith.truncf %188 : vector<8x256xf32> to vector<8x256xbf16>
    %cst_95 = arith.constant dense<0.000000e+00> : vector<8x256xf32>
    %192 = tpu.matmul %190, %191, %cst_95 {dimension_numbers = #tpu.dot_dimension_numbers<[1], [0], [0], [1], [0, 0, 1, 1], [], []>} : vector<8x8xbf16>, vector<8x256xbf16>, vector<8x256xf32> -> vector<8x256xf32>
    %c255_i32_96 = arith.constant 255 : i32
    %193 = tpu.dynamic_rotate %188 by %c255_i32_96 dim 1 : vector<8x256xf32>, i32 -> vector<8x256xf32>
    %cst_97 = arith.constant 0xFF800000 : f32
    %194 = vector.broadcast %cst_97 : f32 to vector<8x256xf32>
    %195 = arith.select %18, %193, %194 : vector<8x256xi1>, vector<8x256xf32>
    %c1_i32_98 = arith.constant 1 : i32
    %196 = tpu.dynamic_rotate %188 by %c1_i32_98 dim 1 : vector<8x256xf32>, i32 -> vector<8x256xf32>
    %cst_99 = arith.constant 0xFF800000 : f32
    %197 = vector.broadcast %cst_99 : f32 to vector<8x256xf32>
    %198 = arith.select %20, %196, %197 : vector<8x256xi1>, vector<8x256xf32>
    %199 = arith.maximumf %195, %198 : vector<8x256xf32>
    %200 = arith.maximumf %188, %199 : vector<8x256xf32>
    %c255_i32_100 = arith.constant 255 : i32
    %201 = tpu.dynamic_rotate %200 by %c255_i32_100 dim 1 : vector<8x256xf32>, i32 -> vector<8x256xf32>
    %cst_101 = arith.constant 0xFF800000 : f32
    %202 = vector.broadcast %cst_101 : f32 to vector<8x256xf32>
    %203 = arith.select %18, %201, %202 : vector<8x256xi1>, vector<8x256xf32>
    %c1_i32_102 = arith.constant 1 : i32
    %204 = tpu.dynamic_rotate %200 by %c1_i32_102 dim 1 : vector<8x256xf32>, i32 -> vector<8x256xf32>
    %cst_103 = arith.constant 0xFF800000 : f32
    %205 = vector.broadcast %cst_103 : f32 to vector<8x256xf32>
    %206 = arith.select %20, %204, %205 : vector<8x256xi1>, vector<8x256xf32>
    %207 = arith.maximumf %203, %206 : vector<8x256xf32>
    %208 = arith.maximumf %200, %207 : vector<8x256xf32>
    %c240_i32_104 = arith.constant 240 : i32
    %209 = tpu.dynamic_rotate %208 by %c240_i32_104 dim 1 : vector<8x256xf32>, i32 -> vector<8x256xf32>
    %cst_105 = arith.constant 0xFF800000 : f32
    %210 = vector.broadcast %cst_105 : f32 to vector<8x256xf32>
    %211 = arith.select %22, %209, %210 : vector<8x256xi1>, vector<8x256xf32>
    %c16_i32_106 = arith.constant 16 : i32
    %212 = tpu.dynamic_rotate %208 by %c16_i32_106 dim 1 : vector<8x256xf32>, i32 -> vector<8x256xf32>
    %cst_107 = arith.constant 0xFF800000 : f32
    %213 = vector.broadcast %cst_107 : f32 to vector<8x256xf32>
    %214 = arith.select %24, %212, %213 : vector<8x256xi1>, vector<8x256xf32>
    %215 = arith.maximumf %211, %214 : vector<8x256xf32>
    %216 = arith.maximumf %208, %215 : vector<8x256xf32>
    %c240_i32_108 = arith.constant 240 : i32
    %217 = tpu.dynamic_rotate %216 by %c240_i32_108 dim 1 : vector<8x256xf32>, i32 -> vector<8x256xf32>
    %cst_109 = arith.constant 0xFF800000 : f32
    %218 = vector.broadcast %cst_109 : f32 to vector<8x256xf32>
    %219 = arith.select %22, %217, %218 : vector<8x256xi1>, vector<8x256xf32>
    %c16_i32_110 = arith.constant 16 : i32
    %220 = tpu.dynamic_rotate %216 by %c16_i32_110 dim 1 : vector<8x256xf32>, i32 -> vector<8x256xf32>
    %cst_111 = arith.constant 0xFF800000 : f32
    %221 = vector.broadcast %cst_111 : f32 to vector<8x256xf32>
    %222 = arith.select %24, %220, %221 : vector<8x256xi1>, vector<8x256xf32>
    %223 = arith.maximumf %219, %222 : vector<8x256xf32>
    %224 = arith.maximumf %216, %223 : vector<8x256xf32>
    %c1_112 = arith.constant 1 : index
    %c0_113 = arith.constant 0 : index
    %c0_114 = arith.constant 0 : index
    %225 = vector.load %arg5[%c1_112, %c0_113, %c0_114] : memref<4x8x8xbf16, #tpu.memory_space<vmem>>, vector<1x8x8xbf16>
    %226 = vector.shape_cast %225 : vector<1x8x8xbf16> to vector<8x8xbf16>
    %227 = arith.truncf %224 : vector<8x256xf32> to vector<8x256xbf16>
    %cst_115 = arith.constant dense<0.000000e+00> : vector<8x256xf32>
    %228 = tpu.matmul %226, %227, %cst_115 {dimension_numbers = #tpu.dot_dimension_numbers<[1], [0], [0], [1], [0, 0, 1, 1], [], []>} : vector<8x8xbf16>, vector<8x256xbf16>, vector<8x256xf32> -> vector<8x256xf32>
    %229 = arith.addf %192, %228 : vector<8x256xf32>
    %c255_i32_116 = arith.constant 255 : i32
    %230 = tpu.dynamic_rotate %224 by %c255_i32_116 dim 1 : vector<8x256xf32>, i32 -> vector<8x256xf32>
    %cst_117 = arith.constant 0xFF800000 : f32
    %231 = vector.broadcast %cst_117 : f32 to vector<8x256xf32>
    %232 = arith.select %18, %230, %231 : vector<8x256xi1>, vector<8x256xf32>
    %c1_i32_118 = arith.constant 1 : i32
    %233 = tpu.dynamic_rotate %224 by %c1_i32_118 dim 1 : vector<8x256xf32>, i32 -> vector<8x256xf32>
    %cst_119 = arith.constant 0xFF800000 : f32
    %234 = vector.broadcast %cst_119 : f32 to vector<8x256xf32>
    %235 = arith.select %20, %233, %234 : vector<8x256xi1>, vector<8x256xf32>
    %236 = arith.maximumf %232, %235 : vector<8x256xf32>
    %237 = arith.maximumf %224, %236 : vector<8x256xf32>
    %c255_i32_120 = arith.constant 255 : i32
    %238 = tpu.dynamic_rotate %237 by %c255_i32_120 dim 1 : vector<8x256xf32>, i32 -> vector<8x256xf32>
    %cst_121 = arith.constant 0xFF800000 : f32
    %239 = vector.broadcast %cst_121 : f32 to vector<8x256xf32>
    %240 = arith.select %18, %238, %239 : vector<8x256xi1>, vector<8x256xf32>
    %c1_i32_122 = arith.constant 1 : i32
    %241 = tpu.dynamic_rotate %237 by %c1_i32_122 dim 1 : vector<8x256xf32>, i32 -> vector<8x256xf32>
    %cst_123 = arith.constant 0xFF800000 : f32
    %242 = vector.broadcast %cst_123 : f32 to vector<8x256xf32>
    %243 = arith.select %20, %241, %242 : vector<8x256xi1>, vector<8x256xf32>
    %244 = arith.maximumf %240, %243 : vector<8x256xf32>
    %245 = arith.maximumf %237, %244 : vector<8x256xf32>
    %c240_i32_124 = arith.constant 240 : i32
    %246 = tpu.dynamic_rotate %245 by %c240_i32_124 dim 1 : vector<8x256xf32>, i32 -> vector<8x256xf32>
    %cst_125 = arith.constant 0xFF800000 : f32
    %247 = vector.broadcast %cst_125 : f32 to vector<8x256xf32>
    %248 = arith.select %22, %246, %247 : vector<8x256xi1>, vector<8x256xf32>
    %c16_i32_126 = arith.constant 16 : i32
    %249 = tpu.dynamic_rotate %245 by %c16_i32_126 dim 1 : vector<8x256xf32>, i32 -> vector<8x256xf32>
    %cst_127 = arith.constant 0xFF800000 : f32
    %250 = vector.broadcast %cst_127 : f32 to vector<8x256xf32>
    %251 = arith.select %24, %249, %250 : vector<8x256xi1>, vector<8x256xf32>
    %252 = arith.maximumf %248, %251 : vector<8x256xf32>
    %253 = arith.maximumf %245, %252 : vector<8x256xf32>
    %c240_i32_128 = arith.constant 240 : i32
    %254 = tpu.dynamic_rotate %253 by %c240_i32_128 dim 1 : vector<8x256xf32>, i32 -> vector<8x256xf32>
    %cst_129 = arith.constant 0xFF800000 : f32
    %255 = vector.broadcast %cst_129 : f32 to vector<8x256xf32>
    %256 = arith.select %22, %254, %255 : vector<8x256xi1>, vector<8x256xf32>
    %c16_i32_130 = arith.constant 16 : i32
    %257 = tpu.dynamic_rotate %253 by %c16_i32_130 dim 1 : vector<8x256xf32>, i32 -> vector<8x256xf32>
    %cst_131 = arith.constant 0xFF800000 : f32
    %258 = vector.broadcast %cst_131 : f32 to vector<8x256xf32>
    %259 = arith.select %24, %257, %258 : vector<8x256xi1>, vector<8x256xf32>
    %260 = arith.maximumf %256, %259 : vector<8x256xf32>
    %261 = arith.maximumf %253, %260 : vector<8x256xf32>
    %c2_132 = arith.constant 2 : index
    %c0_133 = arith.constant 0 : index
    %c0_134 = arith.constant 0 : index
    %262 = vector.load %arg5[%c2_132, %c0_133, %c0_134] : memref<4x8x8xbf16, #tpu.memory_space<vmem>>, vector<1x8x8xbf16>
    %263 = vector.shape_cast %262 : vector<1x8x8xbf16> to vector<8x8xbf16>
    %264 = arith.truncf %261 : vector<8x256xf32> to vector<8x256xbf16>
    %cst_135 = arith.constant dense<0.000000e+00> : vector<8x256xf32>
    %265 = tpu.matmul %263, %264, %cst_135 {dimension_numbers = #tpu.dot_dimension_numbers<[1], [0], [0], [1], [0, 0, 1, 1], [], []>} : vector<8x8xbf16>, vector<8x256xbf16>, vector<8x256xf32> -> vector<8x256xf32>
    %266 = arith.addf %229, %265 : vector<8x256xf32>
    %c255_i32_136 = arith.constant 255 : i32
    %267 = tpu.dynamic_rotate %261 by %c255_i32_136 dim 1 : vector<8x256xf32>, i32 -> vector<8x256xf32>
    %cst_137 = arith.constant 0xFF800000 : f32
    %268 = vector.broadcast %cst_137 : f32 to vector<8x256xf32>
    %269 = arith.select %18, %267, %268 : vector<8x256xi1>, vector<8x256xf32>
    %c1_i32_138 = arith.constant 1 : i32
    %270 = tpu.dynamic_rotate %261 by %c1_i32_138 dim 1 : vector<8x256xf32>, i32 -> vector<8x256xf32>
    %cst_139 = arith.constant 0xFF800000 : f32
    %271 = vector.broadcast %cst_139 : f32 to vector<8x256xf32>
    %272 = arith.select %20, %270, %271 : vector<8x256xi1>, vector<8x256xf32>
    %273 = arith.maximumf %269, %272 : vector<8x256xf32>
    %274 = arith.maximumf %261, %273 : vector<8x256xf32>
    %c255_i32_140 = arith.constant 255 : i32
    %275 = tpu.dynamic_rotate %274 by %c255_i32_140 dim 1 : vector<8x256xf32>, i32 -> vector<8x256xf32>
    %cst_141 = arith.constant 0xFF800000 : f32
    %276 = vector.broadcast %cst_141 : f32 to vector<8x256xf32>
    %277 = arith.select %18, %275, %276 : vector<8x256xi1>, vector<8x256xf32>
    %c1_i32_142 = arith.constant 1 : i32
    %278 = tpu.dynamic_rotate %274 by %c1_i32_142 dim 1 : vector<8x256xf32>, i32 -> vector<8x256xf32>
    %cst_143 = arith.constant 0xFF800000 : f32
    %279 = vector.broadcast %cst_143 : f32 to vector<8x256xf32>
    %280 = arith.select %20, %278, %279 : vector<8x256xi1>, vector<8x256xf32>
    %281 = arith.maximumf %277, %280 : vector<8x256xf32>
    %282 = arith.maximumf %274, %281 : vector<8x256xf32>
    %c240_i32_144 = arith.constant 240 : i32
    %283 = tpu.dynamic_rotate %282 by %c240_i32_144 dim 1 : vector<8x256xf32>, i32 -> vector<8x256xf32>
    %cst_145 = arith.constant 0xFF800000 : f32
    %284 = vector.broadcast %cst_145 : f32 to vector<8x256xf32>
    %285 = arith.select %22, %283, %284 : vector<8x256xi1>, vector<8x256xf32>
    %c16_i32_146 = arith.constant 16 : i32
    %286 = tpu.dynamic_rotate %282 by %c16_i32_146 dim 1 : vector<8x256xf32>, i32 -> vector<8x256xf32>
    %cst_147 = arith.constant 0xFF800000 : f32
    %287 = vector.broadcast %cst_147 : f32 to vector<8x256xf32>
    %288 = arith.select %24, %286, %287 : vector<8x256xi1>, vector<8x256xf32>
    %289 = arith.maximumf %285, %288 : vector<8x256xf32>
    %290 = arith.maximumf %282, %289 : vector<8x256xf32>
    %c240_i32_148 = arith.constant 240 : i32
    %291 = tpu.dynamic_rotate %290 by %c240_i32_148 dim 1 : vector<8x256xf32>, i32 -> vector<8x256xf32>
    %cst_149 = arith.constant 0xFF800000 : f32
    %292 = vector.broadcast %cst_149 : f32 to vector<8x256xf32>
    %293 = arith.select %22, %291, %292 : vector<8x256xi1>, vector<8x256xf32>
    %c16_i32_150 = arith.constant 16 : i32
    %294 = tpu.dynamic_rotate %290 by %c16_i32_150 dim 1 : vector<8x256xf32>, i32 -> vector<8x256xf32>
    %cst_151 = arith.constant 0xFF800000 : f32
    %295 = vector.broadcast %cst_151 : f32 to vector<8x256xf32>
    %296 = arith.select %24, %294, %295 : vector<8x256xi1>, vector<8x256xf32>
    %297 = arith.maximumf %293, %296 : vector<8x256xf32>
    %298 = arith.maximumf %290, %297 : vector<8x256xf32>
    %c3_152 = arith.constant 3 : index
    %c0_153 = arith.constant 0 : index
    %c0_154 = arith.constant 0 : index
    %299 = vector.load %arg5[%c3_152, %c0_153, %c0_154] : memref<4x8x8xbf16, #tpu.memory_space<vmem>>, vector<1x8x8xbf16>
    %300 = vector.shape_cast %299 : vector<1x8x8xbf16> to vector<8x8xbf16>
    %301 = arith.truncf %298 : vector<8x256xf32> to vector<8x256xbf16>
    %cst_155 = arith.constant dense<0.000000e+00> : vector<8x256xf32>
    %302 = tpu.matmul %300, %301, %cst_155 {dimension_numbers = #tpu.dot_dimension_numbers<[1], [0], [0], [1], [0, 0, 1, 1], [], []>} : vector<8x8xbf16>, vector<8x256xbf16>, vector<8x256xf32> -> vector<8x256xf32>
    %303 = arith.addf %266, %302 : vector<8x256xf32>
    %304 = vector.broadcast %28 : vector<8x1xf32> to vector<8x256xf32>
    %305 = arith.mulf %303, %304 : vector<8x256xf32>
    %306 = vector.broadcast %29 : vector<8x1xf32> to vector<8x256xf32>
    %307 = arith.addf %305, %306 : vector<8x256xf32>
    %cst_156 = arith.constant 0.000000e+00 : f32
    %308 = vector.broadcast %cst_156 : f32 to vector<8x256xf32>
    %309 = arith.subf %308, %307 : vector<8x256xf32>
    %310 = math.exp %309 : vector<8x256xf32>
    %cst_157 = arith.constant 1.000000e+00 : f32
    %311 = vector.broadcast %cst_157 : f32 to vector<8x256xf32>
    %312 = arith.addf %311, %310 : vector<8x256xf32>
    %313 = tpu.reciprocal %312 {approx = true} : vector<8x256xf32> -> vector<8x256xf32>
    %314 = arith.mulf %307, %313 : vector<8x256xf32>
    %c1_158 = arith.constant 1 : index
    %c0_159 = arith.constant 0 : index
    %c0_160 = arith.constant 0 : index
    %315 = vector.load %arg8[%c1_158, %c0_159, %c0_160] : memref<2x8x256xf32, #tpu.memory_space<vmem>>, vector<1x8x256xf32>
    %316 = vector.shape_cast %315 : vector<1x8x256xf32> to vector<8x256xf32>
    %317 = vector.shape_cast %314 : vector<8x256xf32> to vector<1x8x256xf32>
    tpu.vector_store %arg8[%c1_158, %c0_159, %c0_160], %317 {strides = array<i32>} : memref<2x8x256xf32, #tpu.memory_space<vmem>>, vector<1x8x256xf32>,
    return
  }
  func.func @transform_0(%arg0: i32) -> (i32, i32, i32) {
    %c0_i32 = arith.constant 0 : i32
    %c0_i32_0 = arith.constant 0 : i32
    %c0_i32_1 = arith.constant 0 : i32
    return %arg0, %c0_i32, %c0_i32_0 : i32, i32, i32
  }
  func.func @transform_1(%arg0: i32) -> (i32, i32) {
    %c0_i32 = arith.constant 0 : i32
    %c0_i32_0 = arith.constant 0 : i32
    %c0_i32_1 = arith.constant 0 : i32
    return %c0_i32, %c0_i32_0 : i32, i32
  }
  func.func @transform_2(%arg0: i32) -> (i32, i32) {
    %c0_i32 = arith.constant 0 : i32
    %c0_i32_0 = arith.constant 0 : i32
    %c0_i32_1 = arith.constant 0 : i32
    return %c0_i32, %c0_i32_0 : i32, i32
  }
  func.func @transform_3(%arg0: i32) -> (i32, i32) {
    %c0_i32 = arith.constant 0 : i32
    %c0_i32_0 = arith.constant 0 : i32
    %c0_i32_1 = arith.constant 0 : i32
    return %c0_i32, %c0_i32_0 : i32, i32
  }
  func.func @transform_4(%arg0: i32) -> (i32, i32, i32) {
    %c0_i32 = arith.constant 0 : i32
    %c0_i32_0 = arith.constant 0 : i32
    %c0_i32_1 = arith.constant 0 : i32
    %c0_i32_2 = arith.constant 0 : i32
    return %c0_i32, %c0_i32_0, %c0_i32_1 : i32, i32, i32
  }
  func.func @transform_5(%arg0: i32) -> (i32, i32) {
    %c0_i32 = arith.constant 0 : i32
    %c0_i32_0 = arith.constant 0 : i32
    %c0_i32_1 = arith.constant 0 : i32
    return %c0_i32, %c0_i32_0 : i32, i32
  }
  func.func @transform_6(%arg0: i32) -> (i32, i32) {
    %c0_i32 = arith.constant 0 : i32
    %c0_i32_0 = arith.constant 0 : i32
    %c0_i32_1 = arith.constant 0 : i32
    return %c0_i32, %c0_i32_0 : i32, i32
  }
  func.func @transform_7(%arg0: i32) -> (i32, i32, i32) {
    %c0_i32 = arith.constant 0 : i32
    %c0_i32_0 = arith.constant 0 : i32
    %c0_i32_1 = arith.constant 0 : i32
    return %arg0, %c0_i32, %c0_i32_0 : i32, i32, i32
  }
}

</mosaic_0001>

<bundles_post_ra>
// kernel: tpu_custom_call.1
= control target key start
LH: loop header
LB: loop body
LE: loop exit
PB: predicated region body
PF: predicated region fallthrough
CT: control target
= control target key end

     0   :  { %vm78_vm0 = vcmask 1043456   ;;  %v1572_v6 = vmov 0   ;;  %s2180_s0 = inlined_call_operand.vmem [shape: bf16[2,8,256], index: 0, kind: input, shape index: {}]   ;;  %s2181_s1 = inlined_call_operand.vmem [shape: bf16[8,8], index: 1, kind: input, shape index: {}]   ;;  %s2182_s2 = inlined_call_operand.vmem [shape: f32[8,1], index: 2, kind: input, shape index: {}]   ;;  %s2183_s3 = inlined_call_operand.vmem [shape: f32[8,1], index: 3, kind: input, shape index: {}]   ;;  %s2184_s4 = inlined_call_operand.vmem [shape: bf16[4,8,8], index: 4, kind: input, shape index: {}]   ;;  %s2185_s5 = inlined_call_operand.vmem [shape: f32[8,1], index: 5, kind: input, shape index: {}]   ;;  %s2186_s6 = inlined_call_operand.vmem [shape: f32[8,1], index: 6, kind: input, shape index: {}]   ;;  %s2187_s7 = inlined_call_operand.hbm [shape: f32[2,8,256], index: 7, kind: output, shape index: {}]  }
   0x1   :  { %v68_v0 = vld [vmem:[%s2180_s0] sm:$0xff]  ;;  %v1223_v1 = vld [vmem:[%s2180_s0 + $0x8] sm:$0xff]  ;;  %117 = vmatprep.mubr.bf16.mxu1 %v1572_v6 }
   0x2   :  { %v1209_v2 = vcombine.high %v68_v0, %v68_v0  ;;  %v1225_v3 = vcombine.high %v1223_v1, %v1223_v1  ;;  %v1208_v4 = vcombine.low %v68_v0, %v68_v0  ;;  %v1224_v5 = vcombine.low %v1223_v1, %v1223_v1 }
   0x3   :  { %12 = vsyncpa [#allocation3], 0  ;;  %690 = vmatprep.mubr.bf16.mxu0 %v1572_v6  ;;  %1270 = vset.pattern.permute.xlu0 %v1572_v6  ;;  %v64_v7 = vld [vmem:[%s2182_s2] sm:$0xff]  ;;  %vm74_vm1 = vcmask 64512   ;;  %v28_v56 = vlaneseq  ;;  %s1575_s9 = smov 16   ;;  %s1576_s10 = smov 112  }
   0x4   :  { %1210 = vmatprep.subr.msk.bf16.mxu1 %vm78_vm0, %v1209_v2  ;;  %1226 = vmatprep.subr.msk.bf16.mxu0 %vm78_vm0, %v1225_v3  ;;  %v80_v8 = vsel %vm78_vm0, %v1208_v4, 0  ;;  %v653_v9 = vsel %vm78_vm0, %v1224_v5, 0  ;;  %v63_v10 = vld [vmem:[%s2181_s1] sm:$0xf]  ;;  %s1573_s1 = smov 127  }
   0x5   :  { %86 = vmatpush1.bf16.msra.mxu1 %v80_v8  ;;  %659 = vmatpush1.bf16.msra.mxu0 %v653_v9  ;;  %v65_v11 = vld [vmem:[%s2183_s3] sm:$0xff]  ;;  %s1574_s3 = smov 1   ;;  %v1662_v57 = vand.u32 127, %v28_v56  ;;  %v1217_v4 = vld [vmem:[%s2184_s4 + $0x8] sm:$0xf] }
   0x6   :  { %128 = vperm.xlu0 %1270, %v64_v7   ;;  %1511 = vset.pattern.permute.xlu1 %v1572_v6 }
   0x7   :  { %v1665_v58 = vadd.s32 128, %v1662_v57  ;;  %v35_v59 = vand.u32 15, %v1662_v57  ;;  %vm161_vm2 = vcmp.lt.s32.totalorder %v1662_v57, 127  ;;  %vm170_vm3 = vcmp.lt.s32.totalorder %v1662_v57, 1 }
   0x8   :  { %1211 = vmatmul.mubr.msk.bf16.vlgmr.msra.gmra.mrb[0].mxu1 %vm74_vm1, %v63_v10  ;;  %1227 = vmatmul.mubr.msk.bf16.vlgmr.msra.gmra.mrb[0].mxu0 %vm74_vm1, %v63_v10  ;;  %vm203_vm8 = vcmp.lt.s32.totalorder %v1662_v57, 112  ;;  %vm212_vm9 = vcmp.lt.s32.totalorder %v1662_v57, 16  ;;  %vm61_vm10 = vcmp.ge.s32.totalorder %v1662_v57, 16 }
   0x9   :  { %286 = vmatprep.mubr.bf16.mxu1 %v1572_v6  ;;  %844 = vmatprep.mubr.bf16.mxu0 %v1572_v6  ;;  %v42_v60 = vand.u32 15, %v1665_v58  ;;  %vm1671_vm4 = vcmp.lt.s32.totalorder %v35_v59, 15  ;;  %vm1679_vm6 = vcmp.ge.s32.totalorder %v35_v59, 1  ;;  %vm60_vm11 = vcmp.lt.s32.totalorder %v1665_v58, 240 }
   0xa   :  { %135 = vperm.xlu0 %1270, %v65_v11  }
   0xb   :  { %vm1675_vm5 = vcmp.lt.s32.totalorder %v42_v60, 15  ;;  %vm1683_vm7 = vcmp.ge.s32.totalorder %v42_v60, 1 }
  0x85   :  { %v129_v12 = vpop.permute.xlu0 %128 }
  0x89   :  { %v136_v13 = vpop.permute.xlu0 %135 }
  0xdb   :  { %v119_v14 = vpop.f32.mrb[0].mxu1  ;;  %v692_v15 = vpop.f32.mrb[0].mxu0 }
  0xdc   :  { %v131_v16 = vmul.f32 %v129_v12, %v119_v14  ;;  %v699_v17 = vmul.f32 %v692_v15, %v129_v12  ;;  %v121_v18 = vpop.f32.mrb[1].mxu1  ;;  %v694_v19 = vpop.f32.mrb[1].mxu0 }
  0xdd   :  { %v132_v20 = vmul.f32 %v129_v12, %v121_v18  ;;  %v700_v21 = vmul.f32 %v694_v19, %v129_v12  ;;  %v123_v22 = vpop.f32.mrb[2].mxu1  ;;  %v696_v23 = vpop.f32.mrb[2].mxu0 }
  0xde   :  { %v138_v24 = vadd.f32 %v136_v13, %v131_v16  ;;  %v701_v25 = vadd.f32 %v699_v17, %v136_v13  ;;  %v124_v26 = vpop.f32.mrb[3].mxu1  ;;  %v697_v27 = vpop.f32.mrb[3].mxu0 }
  0xdf   :  { %v139_v28 = vadd.f32 %v136_v13, %v132_v20  ;;  %v702_v29 = vadd.f32 %v700_v21, %v136_v13 }
  0xe0   :  { %v140_v30 = vsub.f32 0.0, %v138_v24  ;;  %v703_v31 = vsub.f32 0.0, %v701_v25 }
  0xe1   :  { %v141_v32 = vsub.f32 0.0, %v139_v28  ;;  %v704_v33 = vsub.f32 0.0, %v702_v29 }
  0xe2   :  { %v142_v34 = vmul.f32 1.442695, %v140_v30  ;;  %v705_v35 = vmul.f32 1.442695, %v703_v31 }
  0xe3   :  { %v144_v36 = vmul.f32 1.442695, %v141_v32  ;;  %v707_v37 = vmul.f32 1.442695, %v704_v33 }
  0xe4   :  { %1516 = vpow2.f32 %v142_v34 }
  0xe5   :  { %1518 = vpow2.f32 %v705_v35 }
  0xe6   :  { %1520 = vpow2.f32 %v144_v36 }
  0xe7   :  { %1522 = vpow2.f32 %v707_v37 }
  0xee   :  { %v1517_v38 = vpop.eup %1516 }
  0xef   :  { %v1519_v39 = vpop.eup %1518  ;;  %v146_v40 = vadd.f32 1.0, %v1517_v38 }
  0xf0   :  { %v1521_v41 = vpop.eup %1520  ;;  %v709_v42 = vadd.f32 1.0, %v1519_v39 }
  0xf1   :  { %v1523_v43 = vpop.eup %1522  ;;  %1524 = vrcp.f32 %v146_v40  ;;  %v147_v44 = vadd.f32 1.0, %v1521_v41 }
  0xf2   :  { %1526 = vrcp.f32 %v709_v42  ;;  %v710_v45 = vadd.f32 1.0, %v1523_v43 }
  0xf3   :  { %1528 = vrcp.f32 %v147_v44 }
  0xf4   :  { %1530 = vrcp.f32 %v710_v45 }
  0xfb   :  { %v1525_v46 = vpop.eup %1524 }
  0xfc   :  { %v1527_v47 = vpop.eup %1526  ;;  %v1646_v48 = vmul.f32 %v1525_v46, %v138_v24 }
  0xfd   :  { %v1529_v49 = vpop.eup %1528  ;;  %v1648_v50 = vmul.f32 %v1527_v47, %v701_v25 }
  0xfe   :  { %v1531_v51 = vpop.eup %1530  ;;  %v1650_v52 = vmul.f32 %v1529_v49, %v139_v28 }
  0xff   :  { %v1652_v53 = vmul.f32 %v1531_v51, %v702_v29 }
 0x100   :  { %v1271_v54 = vpack.i.bf16 %v1650_v52, %v1646_v48 }
 0x101   :  { %v1281_v55 = vpack.i.bf16 %v1652_v53, %v1648_v50 }
 0x102   :  { %1272 = vrot.lane.b32.xlu1 %v1271_v54, %s1573_s1 }
 0x103   :  { %1282 = vrot.lane.b32.xlu0 %v1281_v55, %s1573_s1 }
 0x106   :  { %1277 = vrot.lane.b32.xlu1 %v1271_v54, %s1574_s3 }
 0x10a   :  { %1287 = vrot.lane.b32.xlu1 %v1281_v55, %s1574_s3 }
 0x174   :  { %v1273_v61 = vpop.permute.xlu1 %1272 }
 0x175   :  { %v1283_v62 = vpop.permute.xlu0 %1282  ;;  %v1275_v63 = vunpack.i.h.bf16 %v1273_v61  ;;  %v1274_v0 = vunpack.i.l.bf16 %v1273_v61 }
 0x176   :  { %v1285_v1 = vunpack.i.h.bf16 %v1283_v62  ;;  %v1284_v2 = vunpack.i.l.bf16 %v1283_v62 }
 0x177   :  { %v162_v9 = vsel %vm161_vm2, %v1274_v0, %v1275_v63  ;;  %v163_v10 = vsel %vm161_vm2, %v1275_v63, %v1274_v0 }
 0x178   :  { %v1278_v5 = vpop.permute.xlu1 %1277  ;;  %v724_v13 = vsel %vm161_vm2, %v1284_v2, %v1285_v1  ;;  %v725_v14 = vsel %vm161_vm2, %v1285_v1, %v1284_v2  ;;  %v164_v17 = vsel %vm1671_vm4, %v162_v9, -inf  ;;  %v165_v18 = vsel %vm1675_vm5, %v163_v10, -inf }
 0x179   :  { %v1280_v11 = vunpack.i.h.bf16 %v1278_v5  ;;  %v1279_v12 = vunpack.i.l.bf16 %v1278_v5  ;;  %v726_v30 = vsel %vm1671_vm4, %v724_v13, -inf  ;;  %v727_v31 = vsel %vm1675_vm5, %v725_v14, -inf }
 0x17b   :  { %v171_v15 = vsel %vm170_vm3, %v1279_v12, %v1280_v11  ;;  %v172_v16 = vsel %vm170_vm3, %v1280_v11, %v1279_v12 }
 0x17c   :  { %v173_v19 = vsel %vm1679_vm6, %v172_v16, -inf  ;;  %v174_v20 = vsel %vm1683_vm7, %v171_v15, -inf  ;;  %v1288_v21 = vpop.permute.xlu1 %1287 }
 0x17d   :  { %v175_v22 = vmax.f32 %v164_v17, %v173_v19  ;;  %v176_v23 = vmax.f32 %v165_v18, %v174_v20  ;;  %v1290_v24 = vunpack.i.h.bf16 %v1288_v21  ;;  %v1289_v25 = vunpack.i.l.bf16 %v1288_v21 }
 0x17f   :  { %v732_v26 = vsel %vm170_vm3, %v1289_v25, %v1290_v24  ;;  %v733_v27 = vsel %vm170_vm3, %v1290_v24, %v1289_v25  ;;  %v177_v28 = vmax.f32 %v1646_v48, %v175_v22  ;;  %v178_v29 = vmax.f32 %v1650_v52, %v176_v23 }
 0x180   :  { %v734_v32 = vsel %vm1679_vm6, %v733_v27, -inf  ;;  %v735_v33 = vsel %vm1683_vm7, %v732_v26, -inf }
 0x181   :  { %v736_v34 = vmax.f32 %v726_v30, %v734_v32  ;;  %v737_v35 = vmax.f32 %v727_v31, %v735_v33  ;;  %v1296_v36 = vpack.i.bf16 %v178_v29, %v177_v28 }
 0x183   :  { %1297 = vrot.lane.b32.xlu1 %v1296_v36, %s1574_s3  ;;  %1292 = vrot.lane.b32.xlu0 %v1296_v36, %s1573_s1  ;;  %v738_v37 = vmax.f32 %v1648_v50, %v736_v34  ;;  %v739_v38 = vmax.f32 %v1652_v53, %v737_v35 }
 0x185   :  { %v1306_v39 = vpack.i.bf16 %v739_v38, %v738_v37 }
 0x187   :  { %1307 = vrot.lane.b32.xlu1 %v1306_v39, %s1574_s3  ;;  %1302 = vrot.lane.b32.xlu0 %v1306_v39, %s1573_s1 }
 0x1f5   :  { %v1298_v40 = vpop.permute.xlu1 %1297  ;;  %v1293_v41 = vpop.permute.xlu0 %1292 }
 0x1f6   :  { %v1300_v42 = vunpack.i.h.bf16 %v1298_v40  ;;  %v1299_v43 = vunpack.i.l.bf16 %v1298_v40  ;;  %v1295_v44 = vunpack.i.h.bf16 %v1293_v41  ;;  %v1294_v45 = vunpack.i.l.bf16 %v1293_v41 }
 0x1f8   :  { %v191_v46 = vsel %vm170_vm3, %v1299_v43, %v1300_v42  ;;  %v192_v47 = vsel %vm170_vm3, %v1300_v42, %v1299_v43  ;;  %v183_v49 = vsel %vm161_vm2, %v1294_v45, %v1295_v44  ;;  %v184_v51 = vsel %vm161_vm2, %v1295_v44, %v1294_v45 }
 0x1f9   :  { %v193_v54 = vsel %vm1679_vm6, %v192_v47, -inf  ;;  %v194_v55 = vsel %vm1683_vm7, %v191_v46, -inf  ;;  %v185_v56 = vsel %vm1671_vm4, %v183_v49, -inf  ;;  %v186_v59 = vsel %vm1675_vm5, %v184_v51, -inf  ;;  %v1308_v60 = vpop.permute.xlu1 %1307  ;;  %v1303_v61 = vpop.permute.xlu0 %1302 }
 0x1fa   :  { %v195_v62 = vmax.f32 %v185_v56, %v193_v54  ;;  %v196_v63 = vmax.f32 %v186_v59, %v194_v55  ;;  %v1310_v0 = vunpack.i.h.bf16 %v1308_v60  ;;  %v1309_v1 = vunpack.i.l.bf16 %v1308_v60 }
 0x1fb   :  { %v1305_v2 = vunpack.i.h.bf16 %v1303_v61  ;;  %v1304_v5 = vunpack.i.l.bf16 %v1303_v61 }
 0x1fc   :  { %v752_v9 = vsel %vm170_vm3, %v1309_v1, %v1310_v0  ;;  %v753_v10 = vsel %vm170_vm3, %v1310_v0, %v1309_v1  ;;  %v197_v11 = vmax.f32 %v177_v28, %v195_v62  ;;  %v198_v12 = vmax.f32 %v178_v29, %v196_v63 }
 0x1fd   :  { %v754_v13 = vsel %vm1679_vm6, %v753_v10, -inf  ;;  %v755_v14 = vsel %vm1683_vm7, %v752_v9, -inf  ;;  %v744_v15 = vsel %vm161_vm2, %v1304_v5, %v1305_v2  ;;  %v745_v16 = vsel %vm161_vm2, %v1305_v2, %v1304_v5 }
 0x1fe   :  { %v746_v17 = vsel %vm1671_vm4, %v744_v15, -inf  ;;  %v747_v18 = vsel %vm1675_vm5, %v745_v16, -inf  ;;  %v1316_v19 = vpack.i.bf16 %v198_v12, %v197_v11 }
 0x1ff   :  { %v756_v20 = vmax.f32 %v746_v17, %v754_v13  ;;  %v757_v21 = vmax.f32 %v747_v18, %v755_v14 }
 0x200   :  { %1317 = vrot.lane.b32.xlu1 %v1316_v19, %s1575_s9  ;;  %1312 = vrot.lane.b32.xlu0 %v1316_v19, %s1576_s10 }
 0x201   :  { %v758_v22 = vmax.f32 %v738_v37, %v756_v20  ;;  %v759_v23 = vmax.f32 %v739_v38, %v757_v21 }
 0x203   :  { %v1326_v24 = vpack.i.bf16 %v759_v23, %v758_v22 }
 0x205   :  { %1327 = vrot.lane.b32.xlu1 %v1326_v24, %s1575_s9  ;;  %1322 = vrot.lane.b32.xlu0 %v1326_v24, %s1576_s10 }
 0x272   :  { %v1318_v25 = vpop.permute.xlu1 %1317  ;;  %v1313_v26 = vpop.permute.xlu0 %1312 }
 0x273   :  { %v1320_v27 = vunpack.i.h.bf16 %v1318_v25  ;;  %v1319_v28 = vunpack.i.l.bf16 %v1318_v25  ;;  %v1315_v29 = vunpack.i.h.bf16 %v1313_v26  ;;  %v1314_v30 = vunpack.i.l.bf16 %v1313_v26 }
 0x275   :  { %v213_v31 = vsel %vm212_vm9, %v1319_v28, %v1320_v27  ;;  %v214_v32 = vsel %vm212_vm9, %v1320_v27, %v1319_v28  ;;  %v204_v33 = vsel %vm203_vm8, %v1314_v30, %v1315_v29  ;;  %v205_v34 = vsel %vm203_vm8, %v1315_v29, %v1314_v30 }
 0x276   :  { %v215_v35 = vsel %vm61_vm10, %v214_v32, -inf  ;;  %v207_v36 = vsel %vm60_vm11, %v205_v34, -inf }
 0x277   :  { %v217_v37 = vmax.f32 %v204_v33, %v215_v35  ;;  %v218_v38 = vmax.f32 %v207_v36, %v213_v31  ;;  %v1328_v39 = vpop.permute.xlu1 %1327  ;;  %v1323_v40 = vpop.permute.xlu0 %1322 }
 0x278   :  { %v1330_v41 = vunpack.i.h.bf16 %v1328_v39  ;;  %v1329_v42 = vunpack.i.l.bf16 %v1328_v39  ;;  %v1325_v43 = vunpack.i.h.bf16 %v1323_v40  ;;  %v1324_v44 = vunpack.i.l.bf16 %v1323_v40 }
 0x279   :  { %v219_v45 = vmax.f32 %v197_v11, %v217_v37  ;;  %v220_v46 = vmax.f32 %v198_v12, %v218_v38 }
 0x27a   :  { %v772_v47 = vsel %vm212_vm9, %v1329_v42, %v1330_v41  ;;  %v773_v49 = vsel %vm212_vm9, %v1330_v41, %v1329_v42  ;;  %v764_v51 = vsel %vm203_vm8, %v1324_v44, %v1325_v43  ;;  %v765_v54 = vsel %vm203_vm8, %v1325_v43, %v1324_v44 }
 0x27b   :  { %v774_v55 = vsel %vm61_vm10, %v773_v49, -inf  ;;  %v767_v56 = vsel %vm60_vm11, %v765_v54, -inf  ;;  %v1336_v59 = vpack.i.bf16 %v220_v46, %v219_v45  ;;  %v156_v42 = vpack.c.bf16 %v1650_v52, %v1650_v52  ;;  %v1228_v54 = vld [vmem:[%s2184_s4 + $0x4] sm:$0xf] }
 0x27c   :  { %v776_v60 = vmax.f32 %v764_v51, %v774_v55  ;;  %v777_v61 = vmax.f32 %v767_v56, %v772_v47  ;;  %v155_v43 = vpack.c.bf16 %v1646_v48, %v1646_v48  ;;  %v719_v49 = vpack.c.bf16 %v1652_v53, %v1652_v53 }
 0x27d   :  { %1337 = vrot.lane.b32.xlu1 %v1336_v59, %s1575_s9  ;;  %1332 = vrot.lane.b32.xlu0 %v1336_v59, %s1576_s10  ;;  %v718_v51 = vpack.c.bf16 %v1648_v50, %v1648_v50 }
 0x27e   :  { %v778_v62 = vmax.f32 %v758_v22, %v776_v60  ;;  %v779_v63 = vmax.f32 %v759_v23, %v777_v61  ;;  %v299_v52 = vsel %vm78_vm0, %v155_v43, 0 }
 0x27f   :  { %v857_v55 = vsel %vm78_vm0, %v718_v51, 0 }
 0x280   :  { %v1346_v0 = vpack.i.bf16 %v779_v63, %v778_v62 }
 0x282   :  { %1347 = vrot.lane.b32.xlu1 %v1346_v0, %s1575_s9  ;;  %1342 = vrot.lane.b32.xlu0 %v1346_v0, %s1576_s10 }
 0x2ef   :  { %v1338_v1 = vpop.permute.xlu1 %1337  ;;  %v1333_v2 = vpop.permute.xlu0 %1332 }
 0x2f0   :  { %v1340_v5 = vunpack.i.h.bf16 %v1338_v1  ;;  %v1339_v9 = vunpack.i.l.bf16 %v1338_v1  ;;  %v1335_v10 = vunpack.i.h.bf16 %v1333_v2  ;;  %v1334_v11 = vunpack.i.l.bf16 %v1333_v2 }
 0x2f2   :  { %v233_v12 = vsel %vm212_vm9, %v1339_v9, %v1340_v5  ;;  %v234_v13 = vsel %vm212_vm9, %v1340_v5, %v1339_v9  ;;  %v225_v14 = vsel %vm203_vm8, %v1334_v11, %v1335_v10  ;;  %v226_v15 = vsel %vm203_vm8, %v1335_v10, %v1334_v11 }
 0x2f3   :  { %v235_v16 = vsel %vm61_vm10, %v234_v13, -inf  ;;  %v228_v17 = vsel %vm60_vm11, %v226_v15, -inf }
 0x2f4   :  { %v237_v18 = vmax.f32 %v225_v14, %v235_v16  ;;  %v238_v19 = vmax.f32 %v228_v17, %v233_v12  ;;  %v1348_v20 = vpop.permute.xlu1 %1347  ;;  %v1343_v21 = vpop.permute.xlu0 %1342 }
 0x2f5   :  { %v1350_v22 = vunpack.i.h.bf16 %v1348_v20  ;;  %v1349_v23 = vunpack.i.l.bf16 %v1348_v20  ;;  %v1345_v24 = vunpack.i.h.bf16 %v1343_v21  ;;  %v1344_v25 = vunpack.i.l.bf16 %v1343_v21 }
 0x2f6   :  { %v1807_v26 = vmax.f32 %v219_v45, %v237_v18  ;;  %v1809_v27 = vmax.f32 %v220_v46, %v238_v19  ;;  %v1212_v46 = vld [vmem:[%s2184_s4 + $0x4] sm:$0xf] }
 0x2f7   :  { %v792_v28 = vsel %vm212_vm9, %v1349_v23, %v1350_v22  ;;  %v793_v29 = vsel %vm212_vm9, %v1350_v22, %v1349_v23  ;;  %v784_v30 = vsel %vm203_vm8, %v1344_v25, %v1345_v24  ;;  %v785_v31 = vsel %vm203_vm8, %v1345_v24, %v1344_v25 }
 0x2f8   :  { %v794_v32 = vsel %vm61_vm10, %v793_v29, -inf  ;;  %v787_v33 = vsel %vm60_vm11, %v785_v31, -inf  ;;  %v244_v34 = vpack.c.bf16 %v1809_v27, %v1809_v27  ;;  %v1356_v35 = vpack.i.bf16 %v1809_v27, %v1807_v26 }
 0x2f9   :  { %v796_v36 = vmax.f32 %v784_v30, %v794_v32  ;;  %v797_v37 = vmax.f32 %v787_v33, %v792_v28  ;;  %v243_v38 = vpack.c.bf16 %v1807_v26, %v1807_v26 }
 0x2fa   :  { %1213 = vmatprep.subr.msk.bf16.mxu1 %vm78_vm0, %v244_v34  ;;  %1357 = vrot.lane.b32.xlu1 %v1356_v35, %s1574_s3 }
 0x2fb   :  { %v1831_v39 = vmax.f32 %v778_v62, %v796_v36  ;;  %v1833_v40 = vmax.f32 %v779_v63, %v797_v37  ;;  %1352 = vrot.lane.b32.xlu0 %v1356_v35, %s1573_s1  ;;  %v249_v41 = vsel %vm78_vm0, %v243_v38, 0 }
 0x2fc   :  { %255 = vmatpush1.bf16.msra.mxu1 %v249_v41 }
 0x2fd   :  { %1215 = vmatprep.subr.msk.bf16.mxu1 %vm78_vm0, %v156_v42  ;;  %v802_v44 = vpack.c.bf16 %v1833_v40, %v1833_v40  ;;  %v1366_v45 = vpack.i.bf16 %v1833_v40, %v1831_v39  ;;  %v801_v47 = vpack.c.bf16 %v1831_v39, %v1831_v39 }
 0x2ff   :  { %1229 = vmatprep.subr.msk.bf16.mxu0 %vm78_vm0, %v802_v44  ;;  %1367 = vrot.lane.b32.xlu1 %v1366_v45, %s1574_s3  ;;  %v807_v48 = vsel %vm78_vm0, %v801_v47, 0 }
 0x300   :  { %1362 = vrot.lane.b32.xlu0 %v1366_v45, %s1573_s1  ;;  %1214 = vmatmul.mubr.msk.bf16.vlgmr.msra.gmra.mrb[4].mxu1 %vm74_vm1, %v1212_v46 }
 0x301   :  { %305 = vmatpush1.bf16.msra.mxu1 %v299_v52  ;;  %813 = vmatpush1.bf16.msra.mxu0 %v807_v48 }
 0x302   :  { %1231 = vmatprep.subr.msk.bf16.mxu0 %vm78_vm0, %v719_v49  ;;  %336 = vmatprep.mubr.bf16.mxu1 %v1572_v6 }
 0x304   :  { %1230 = vmatmul.mubr.msk.bf16.vlgmr.msra.gmra.mrb[4].mxu0 %vm74_vm1, %v1228_v54 }
 0x305   :  { %863 = vmatpush1.bf16.msra.mxu0 %v857_v55  ;;  %894 = vmatprep.mubr.bf16.mxu0 %v1572_v6 }
 0x36c   :  { %v1358_v53 = vpop.permute.xlu1 %1357 }
 0x36d   :  { %v1360_v56 = vunpack.i.h.bf16 %v1358_v53  ;;  %v1359_v50 = vunpack.i.l.bf16 %v1358_v53  ;;  %v1353_v59 = vpop.permute.xlu0 %1352 }
 0x36e   :  { %v1355_v60 = vunpack.i.h.bf16 %v1353_v59  ;;  %v1354_v61 = vunpack.i.l.bf16 %v1353_v59 }
 0x36f   :  { %v357_v62 = vsel %vm170_vm3, %v1359_v50, %v1360_v56  ;;  %v358_v63 = vsel %vm170_vm3, %v1360_v56, %v1359_v50 }
 0x370   :  { %v359_v0 = vsel %vm1679_vm6, %v358_v63, -inf  ;;  %v360_v1 = vsel %vm1683_vm7, %v357_v62, -inf  ;;  %v349_v2 = vsel %vm161_vm2, %v1354_v61, %v1355_v60  ;;  %v350_v5 = vsel %vm161_vm2, %v1355_v60, %v1354_v61 }
 0x371   :  { %v351_v9 = vsel %vm1671_vm4, %v349_v2, -inf  ;;  %v352_v10 = vsel %vm1675_vm5, %v350_v5, -inf  ;;  %v1368_v11 = vpop.permute.xlu1 %1367 }
 0x372   :  { %v361_v12 = vmax.f32 %v351_v9, %v359_v0  ;;  %v362_v13 = vmax.f32 %v352_v10, %v360_v1  ;;  %v1370_v14 = vunpack.i.h.bf16 %v1368_v11  ;;  %v1369_v15 = vunpack.i.l.bf16 %v1368_v11  ;;  %v1363_v16 = vpop.permute.xlu0 %1362 }
 0x373   :  { %v1365_v17 = vunpack.i.h.bf16 %v1363_v16  ;;  %v1364_v18 = vunpack.i.l.bf16 %v1363_v16 }
 0x374   :  { %v915_v19 = vsel %vm170_vm3, %v1369_v15, %v1370_v14  ;;  %v916_v20 = vsel %vm170_vm3, %v1370_v14, %v1369_v15  ;;  %v363_v21 = vmax.f32 %v1807_v26, %v361_v12  ;;  %v364_v22 = vmax.f32 %v1809_v27, %v362_v13 }
 0x375   :  { %v917_v23 = vsel %vm1679_vm6, %v916_v20, -inf  ;;  %v918_v24 = vsel %vm1683_vm7, %v915_v19, -inf  ;;  %v907_v25 = vsel %vm161_vm2, %v1364_v18, %v1365_v17  ;;  %v908_v28 = vsel %vm161_vm2, %v1365_v17, %v1364_v18 }
 0x376   :  { %v909_v29 = vsel %vm1671_vm4, %v907_v25, -inf  ;;  %v910_v26 = vsel %vm1675_vm5, %v908_v28, -inf  ;;  %v1376_v30 = vpack.i.bf16 %v364_v22, %v363_v21 }
 0x377   :  { %v919_v27 = vmax.f32 %v909_v29, %v917_v23  ;;  %v920_v31 = vmax.f32 %v910_v26, %v918_v24 }
 0x378   :  { %1377 = vrot.lane.b32.xlu1 %v1376_v30, %s1574_s3  ;;  %1372 = vrot.lane.b32.xlu0 %v1376_v30, %s1573_s1 }
 0x379   :  { %v921_v32 = vmax.f32 %v1831_v39, %v919_v27  ;;  %v922_v33 = vmax.f32 %v1833_v40, %v920_v31 }
 0x37b   :  { %v1386_v34 = vpack.i.bf16 %v922_v33, %v921_v32 }
 0x37d   :  { %1387 = vrot.lane.b32.xlu1 %v1386_v34, %s1574_s3  ;;  %1382 = vrot.lane.b32.xlu0 %v1386_v34, %s1573_s1 }
 0x3ea   :  { %v1378_v35 = vpop.permute.xlu1 %1377  ;;  %v1373_v36 = vpop.permute.xlu0 %1372 }
 0x3eb   :  { %v1380_v37 = vunpack.i.h.bf16 %v1378_v35  ;;  %v1379_v38 = vunpack.i.l.bf16 %v1378_v35  ;;  %v1375_v41 = vunpack.i.h.bf16 %v1373_v36  ;;  %v1374_v42 = vunpack.i.l.bf16 %v1373_v36 }
 0x3ed   :  { %v377_v43 = vsel %vm170_vm3, %v1379_v38, %v1380_v37  ;;  %v378_v44 = vsel %vm170_vm3, %v1380_v37, %v1379_v38  ;;  %v369_v39 = vsel %vm161_vm2, %v1374_v42, %v1375_v41  ;;  %v370_v40 = vsel %vm161_vm2, %v1375_v41, %v1374_v42 }
 0x3ee   :  { %v379_v45 = vsel %vm1679_vm6, %v378_v44, -inf  ;;  %v380_v46 = vsel %vm1683_vm7, %v377_v43, -inf  ;;  %v371_v47 = vsel %vm1671_vm4, %v369_v39, -inf  ;;  %v372_v48 = vsel %vm1675_vm5, %v370_v40, -inf }
 0x3ef   :  { %v381_v52 = vmax.f32 %v371_v47, %v379_v45  ;;  %v382_v49 = vmax.f32 %v372_v48, %v380_v46  ;;  %v1388_v51 = vpop.permute.xlu1 %1387  ;;  %v1383_v54 = vpop.permute.xlu0 %1382  ;;  %v154_v46 = vld [vmem:[%s2184_s4] sm:$0xf] }
 0x3f0   :  { %v1390_v55 = vunpack.i.h.bf16 %v1388_v51  ;;  %v1389_v53 = vunpack.i.l.bf16 %v1388_v51  ;;  %v1385_v56 = vunpack.i.h.bf16 %v1383_v54  ;;  %v1384_v50 = vunpack.i.l.bf16 %v1383_v54  ;;  %1216 = vmatmul.mubr.msk.bf16.vlgmr.msra.gmra.mrb[4].mxu1 %vm74_vm1, %v154_v46  ;;  %v717_v51 = vld [vmem:[%s2184_s4] sm:$0xf] }
 0x3f1   :  { %v383_v59 = vmax.f32 %v363_v21, %v381_v52  ;;  %v384_v60 = vmax.f32 %v364_v22, %v382_v49  ;;  %470 = vmatprep.mubr.bf16.mxu1 %v1572_v6  ;;  %1232 = vmatmul.mubr.msk.bf16.vlgmr.msra.gmra.mrb[4].mxu0 %vm74_vm1, %v717_v51 }
 0x3f2   :  { %v935_v61 = vsel %vm170_vm3, %v1389_v53, %v1390_v55  ;;  %v936_v62 = vsel %vm170_vm3, %v1390_v55, %v1389_v53  ;;  %v927_v63 = vsel %vm161_vm2, %v1384_v50, %v1385_v56  ;;  %v928_v0 = vsel %vm161_vm2, %v1385_v56, %v1384_v50  ;;  %1027 = vmatprep.mubr.bf16.mxu0 %v1572_v6 }
 0x3f3   :  { %v937_v1 = vsel %vm1679_vm6, %v936_v62, -inf  ;;  %v938_v2 = vsel %vm1683_vm7, %v935_v61, -inf  ;;  %v929_v5 = vsel %vm1671_vm4, %v927_v63, -inf  ;;  %v930_v9 = vsel %vm1675_vm5, %v928_v0, -inf }
 0x3f4   :  { %v939_v10 = vmax.f32 %v929_v5, %v937_v1  ;;  %v940_v11 = vmax.f32 %v930_v9, %v938_v2  ;;  %v1396_v12 = vpack.i.bf16 %v384_v60, %v383_v59 }
 0x3f6   :  { %1397 = vrot.lane.b32.xlu1 %v1396_v12, %s1575_s9  ;;  %1392 = vrot.lane.b32.xlu0 %v1396_v12, %s1576_s10  ;;  %v941_v13 = vmax.f32 %v921_v32, %v939_v10  ;;  %v942_v14 = vmax.f32 %v922_v33, %v940_v11 }
 0x3f8   :  { %v1406_v15 = vpack.i.bf16 %v942_v14, %v941_v13 }
 0x3fa   :  { %1407 = vrot.lane.b32.xlu1 %v1406_v15, %s1575_s9  ;;  %1402 = vrot.lane.b32.xlu0 %v1406_v15, %s1576_s10 }
 0x468   :  { %v1398_v16 = vpop.permute.xlu1 %1397  ;;  %v1393_v17 = vpop.permute.xlu0 %1392 }
 0x469   :  { %v1400_v18 = vunpack.i.h.bf16 %v1398_v16  ;;  %v1399_v19 = vunpack.i.l.bf16 %v1398_v16  ;;  %v1395_v20 = vunpack.i.h.bf16 %v1393_v17  ;;  %v1394_v21 = vunpack.i.l.bf16 %v1393_v17 }
 0x46b   :  { %v397_v22 = vsel %vm212_vm9, %v1399_v19, %v1400_v18  ;;  %v398_v23 = vsel %vm212_vm9, %v1400_v18, %v1399_v19  ;;  %v389_v24 = vsel %vm203_vm8, %v1394_v21, %v1395_v20  ;;  %v390_v25 = vsel %vm203_vm8, %v1395_v20, %v1394_v21 }
 0x46c   :  { %v399_v28 = vsel %vm61_vm10, %v398_v23, -inf  ;;  %v392_v29 = vsel %vm60_vm11, %v390_v25, -inf  ;;  %v1408_v26 = vpop.permute.xlu1 %1407  ;;  %v1403_v30 = vpop.permute.xlu0 %1402 }
 0x46d   :  { %v401_v27 = vmax.f32 %v389_v24, %v399_v28  ;;  %v402_v31 = vmax.f32 %v392_v29, %v397_v22  ;;  %v1410_v32 = vunpack.i.h.bf16 %v1408_v26  ;;  %v1409_v33 = vunpack.i.l.bf16 %v1408_v26 }
 0x46e   :  { %v1405_v34 = vunpack.i.h.bf16 %v1403_v30  ;;  %v1404_v35 = vunpack.i.l.bf16 %v1403_v30 }
 0x46f   :  { %v955_v36 = vsel %vm212_vm9, %v1409_v33, %v1410_v32  ;;  %v956_v37 = vsel %vm212_vm9, %v1410_v32, %v1409_v33  ;;  %v403_v38 = vmax.f32 %v383_v59, %v401_v27  ;;  %v404_v41 = vmax.f32 %v384_v60, %v402_v31 }
 0x470   :  { %v957_v42 = vsel %vm61_vm10, %v956_v37, -inf  ;;  %v947_v43 = vsel %vm203_vm8, %v1404_v35, %v1405_v34  ;;  %v948_v44 = vsel %vm203_vm8, %v1405_v34, %v1404_v35 }
 0x471   :  { %v950_v39 = vsel %vm60_vm11, %v948_v44, -inf  ;;  %v959_v40 = vmax.f32 %v947_v43, %v957_v42  ;;  %v1416_v45 = vpack.i.bf16 %v404_v41, %v403_v38 }
 0x472   :  { %v960_v47 = vmax.f32 %v950_v39, %v955_v36 }
 0x473   :  { %1417 = vrot.lane.b32.xlu1 %v1416_v45, %s1575_s9  ;;  %1412 = vrot.lane.b32.xlu0 %v1416_v45, %s1576_s10  ;;  %v961_v48 = vmax.f32 %v941_v13, %v959_v40 }
 0x474   :  { %v962_v52 = vmax.f32 %v942_v14, %v960_v47 }
 0x476   :  { %v1426_v49 = vpack.i.bf16 %v962_v52, %v961_v48 }
 0x478   :  { %1427 = vrot.lane.b32.xlu1 %v1426_v49, %s1575_s9  ;;  %1422 = vrot.lane.b32.xlu0 %v1426_v49, %s1576_s10 }
 0x4e5   :  { %v1418_v54 = vpop.permute.xlu1 %1417  ;;  %v1413_v55 = vpop.permute.xlu0 %1412 }
 0x4e6   :  { %v1420_v53 = vunpack.i.h.bf16 %v1418_v54  ;;  %v1419_v56 = vunpack.i.l.bf16 %v1418_v54  ;;  %v1415_v50 = vunpack.i.h.bf16 %v1413_v55  ;;  %v1414_v59 = vunpack.i.l.bf16 %v1413_v55 }
 0x4e8   :  { %v417_v60 = vsel %vm212_vm9, %v1419_v56, %v1420_v53  ;;  %v418_v61 = vsel %vm212_vm9, %v1420_v53, %v1419_v56  ;;  %v409_v62 = vsel %vm203_vm8, %v1414_v59, %v1415_v50  ;;  %v410_v63 = vsel %vm203_vm8, %v1415_v50, %v1414_v59 }
 0x4e9   :  { %v419_v0 = vsel %vm61_vm10, %v418_v61, -inf  ;;  %v412_v1 = vsel %vm60_vm11, %v410_v63, -inf }
 0x4ea   :  { %v421_v2 = vmax.f32 %v409_v62, %v419_v0  ;;  %v422_v5 = vmax.f32 %v412_v1, %v417_v60  ;;  %v1428_v9 = vpop.permute.xlu1 %1427  ;;  %v1423_v10 = vpop.permute.xlu0 %1422 }
 0x4eb   :  { %v1430_v11 = vunpack.i.h.bf16 %v1428_v9  ;;  %v1429_v12 = vunpack.i.l.bf16 %v1428_v9  ;;  %v1425_v13 = vunpack.i.h.bf16 %v1423_v10  ;;  %v1424_v14 = vunpack.i.l.bf16 %v1423_v10 }
 0x4ec   :  { %v423_v15 = vmax.f32 %v403_v38, %v421_v2  ;;  %v424_v16 = vmax.f32 %v404_v41, %v422_v5 }
 0x4ed   :  { %v975_v17 = vsel %vm212_vm9, %v1429_v12, %v1430_v11  ;;  %v976_v18 = vsel %vm212_vm9, %v1430_v11, %v1429_v12  ;;  %v967_v19 = vsel %vm203_vm8, %v1424_v14, %v1425_v13  ;;  %v968_v20 = vsel %vm203_vm8, %v1425_v13, %v1424_v14 }
 0x4ee   :  { %v977_v21 = vsel %vm61_vm10, %v976_v18, -inf  ;;  %v970_v22 = vsel %vm60_vm11, %v968_v20, -inf  ;;  %v1436_v23 = vpack.i.bf16 %v424_v16, %v423_v15  ;;  %v428_v28 = vpack.c.bf16 %v424_v16, %v424_v16 }
 0x4ef   :  { %v979_v24 = vmax.f32 %v967_v19, %v977_v21  ;;  %v980_v25 = vmax.f32 %v970_v22, %v975_v17  ;;  %v427_v29 = vpack.c.bf16 %v423_v15, %v423_v15 }
 0x4f0   :  { %1437 = vrot.lane.b32.xlu1 %v1436_v23, %s1574_s3  ;;  %1432 = vrot.lane.b32.xlu0 %v1436_v23, %s1573_s1 }
 0x4f1   :  { %v981_v26 = vmax.f32 %v961_v48, %v979_v24  ;;  %v982_v30 = vmax.f32 %v962_v52, %v980_v25  ;;  %1218 = vmatprep.subr.msk.bf16.mxu1 %vm78_vm0, %v428_v28  ;;  %v433_v27 = vsel %vm78_vm0, %v427_v29, 0 }
 0x4f2   :  { %439 = vmatpush1.bf16.msra.mxu1 %v433_v27 }
 0x4f3   :  { %v985_v31 = vpack.c.bf16 %v982_v30, %v982_v30  ;;  %v1446_v32 = vpack.i.bf16 %v982_v30, %v981_v26  ;;  %v984_v33 = vpack.c.bf16 %v981_v26, %v981_v26 }
 0x4f5   :  { %1234 = vmatprep.subr.msk.bf16.mxu0 %vm78_vm0, %v985_v31  ;;  %1447 = vrot.lane.b32.xlu1 %v1446_v32, %s1574_s3  ;;  %v990_v34 = vsel %vm78_vm0, %v984_v33, 0 }
 0x4f6   :  { %1442 = vrot.lane.b32.xlu0 %v1446_v32, %s1573_s1  ;;  %996 = vmatpush1.bf16.msra.mxu0 %v990_v34 }
 0x4f7   :  { %1219 = vmatmul.mubr.msk.bf16.vlgmr.msra.gmra.mrb[4].mxu1 %vm74_vm1, %v1217_v4 }
 0x4f8   :  { %606 = vmatprep.mubr.bf16.mxu1 %v1572_v6 }
 0x562   :  { %v1438_v35 = vpop.permute.xlu1 %1437  ;;  %v1433_v36 = vpop.permute.xlu0 %1432 }
 0x563   :  { %v1440_v37 = vunpack.i.h.bf16 %v1438_v35  ;;  %v1439_v38 = vunpack.i.l.bf16 %v1438_v35  ;;  %v1435_v41 = vunpack.i.h.bf16 %v1433_v36  ;;  %v1434_v42 = vunpack.i.l.bf16 %v1433_v36 }
 0x565   :  { %v493_v43 = vsel %vm170_vm3, %v1439_v38, %v1440_v37  ;;  %v494_v44 = vsel %vm170_vm3, %v1440_v37, %v1439_v38  ;;  %v485_v39 = vsel %vm161_vm2, %v1434_v42, %v1435_v41  ;;  %v486_v40 = vsel %vm161_vm2, %v1435_v41, %v1434_v42 }
 0x566   :  { %v495_v45 = vsel %vm1679_vm6, %v494_v44, -inf  ;;  %v496_v46 = vsel %vm1683_vm7, %v493_v43, -inf  ;;  %v487_v47 = vsel %vm1671_vm4, %v485_v39, -inf  ;;  %v488_v48 = vsel %vm1675_vm5, %v486_v40, -inf }
 0x567   :  { %v497_v52 = vmax.f32 %v487_v47, %v495_v45  ;;  %v498_v49 = vmax.f32 %v488_v48, %v496_v46  ;;  %v1448_v51 = vpop.permute.xlu1 %1447 }
 0x568   :  { %v1450_v54 = vunpack.i.h.bf16 %v1448_v51  ;;  %v1449_v55 = vunpack.i.l.bf16 %v1448_v51  ;;  %v1443_v53 = vpop.permute.xlu0 %1442 }
 0x569   :  { %v1445_v56 = vunpack.i.h.bf16 %v1443_v53  ;;  %v1444_v50 = vunpack.i.l.bf16 %v1443_v53  ;;  %v499_v59 = vmax.f32 %v423_v15, %v497_v52  ;;  %v500_v60 = vmax.f32 %v424_v16, %v498_v49 }
 0x56a   :  { %v1050_v61 = vsel %vm170_vm3, %v1449_v55, %v1450_v54  ;;  %v1051_v62 = vsel %vm170_vm3, %v1450_v54, %v1449_v55 }
 0x56b   :  { %v1052_v63 = vsel %vm1679_vm6, %v1051_v62, -inf  ;;  %v1053_v0 = vsel %vm1683_vm7, %v1050_v61, -inf  ;;  %v1042_v1 = vsel %vm161_vm2, %v1444_v50, %v1445_v56  ;;  %v1043_v2 = vsel %vm161_vm2, %v1445_v56, %v1444_v50 }
 0x56c   :  { %v1044_v5 = vsel %vm1671_vm4, %v1042_v1, -inf  ;;  %v1045_v9 = vsel %vm1675_vm5, %v1043_v2, -inf  ;;  %v1456_v10 = vpack.i.bf16 %v500_v60, %v499_v59 }
 0x56d   :  { %v1054_v11 = vmax.f32 %v1044_v5, %v1052_v63  ;;  %v1055_v12 = vmax.f32 %v1045_v9, %v1053_v0  ;;  %v1233_v5 = vld [vmem:[%s2184_s4 + $0x8] sm:$0xf] }
 0x56e   :  { %1457 = vrot.lane.b32.xlu1 %v1456_v10, %s1574_s3  ;;  %1452 = vrot.lane.b32.xlu0 %v1456_v10, %s1573_s1 }
 0x56f   :  { %v1056_v13 = vmax.f32 %v981_v26, %v1054_v11  ;;  %v1057_v14 = vmax.f32 %v982_v30, %v1055_v12  ;;  %1235 = vmatmul.mubr.msk.bf16.vlgmr.msra.gmra.mrb[4].mxu0 %vm74_vm1, %v1233_v5 }
 0x570   :  { %1162 = vmatprep.mubr.bf16.mxu0 %v1572_v6 }
 0x571   :  { %v1466_v15 = vpack.i.bf16 %v1057_v14, %v1056_v13 }
 0x573   :  { %1467 = vrot.lane.b32.xlu1 %v1466_v15, %s1574_s3  ;;  %1462 = vrot.lane.b32.xlu0 %v1466_v15, %s1573_s1 }
 0x5e0   :  { %v1458_v16 = vpop.permute.xlu1 %1457  ;;  %v1453_v17 = vpop.permute.xlu0 %1452 }
 0x5e1   :  { %v1460_v18 = vunpack.i.h.bf16 %v1458_v16  ;;  %v1459_v19 = vunpack.i.l.bf16 %v1458_v16  ;;  %v1455_v20 = vunpack.i.h.bf16 %v1453_v17  ;;  %v1454_v21 = vunpack.i.l.bf16 %v1453_v17 }
 0x5e3   :  { %v513_v22 = vsel %vm170_vm3, %v1459_v19, %v1460_v18  ;;  %v514_v23 = vsel %vm170_vm3, %v1460_v18, %v1459_v19  ;;  %v505_v24 = vsel %vm161_vm2, %v1454_v21, %v1455_v20  ;;  %v506_v25 = vsel %vm161_vm2, %v1455_v20, %v1454_v21 }
 0x5e4   :  { %v515_v28 = vsel %vm1679_vm6, %v514_v23, -inf  ;;  %v516_v29 = vsel %vm1683_vm7, %v513_v22, -inf  ;;  %v507_v26 = vsel %vm1671_vm4, %v505_v24, -inf  ;;  %v508_v30 = vsel %vm1675_vm5, %v506_v25, -inf }
 0x5e5   :  { %v517_v27 = vmax.f32 %v507_v26, %v515_v28  ;;  %v518_v31 = vmax.f32 %v508_v30, %v516_v29  ;;  %v1468_v32 = vpop.permute.xlu1 %1467  ;;  %v1463_v33 = vpop.permute.xlu0 %1462  ;;  %v66_v26 = vld [vmem:[%s2185_s5] sm:$0xff] }
 0x5e6   :  { %v1470_v34 = vunpack.i.h.bf16 %v1468_v32  ;;  %v1469_v35 = vunpack.i.l.bf16 %v1468_v32  ;;  %v1465_v36 = vunpack.i.h.bf16 %v1463_v33  ;;  %v1464_v37 = vunpack.i.l.bf16 %v1463_v33  ;;  %v67_v30 = vld [vmem:[%s2186_s6] sm:$0xff] }
 0x5e7   :  { %v519_v38 = vmax.f32 %v499_v59, %v517_v27  ;;  %v520_v41 = vmax.f32 %v500_v60, %v518_v31 }
 0x5e8   :  { %v1070_v42 = vsel %vm170_vm3, %v1469_v35, %v1470_v34  ;;  %v1071_v43 = vsel %vm170_vm3, %v1470_v34, %v1469_v35  ;;  %v1062_v44 = vsel %vm161_vm2, %v1464_v37, %v1465_v36  ;;  %v1063_v39 = vsel %vm161_vm2, %v1465_v36, %v1464_v37 }
 0x5e9   :  { %v1072_v40 = vsel %vm1679_vm6, %v1071_v43, -inf  ;;  %v1073_v45 = vsel %vm1683_vm7, %v1070_v42, -inf  ;;  %v1064_v46 = vsel %vm1671_vm4, %v1062_v44, -inf  ;;  %v1065_v47 = vsel %vm1675_vm5, %v1063_v39, -inf }
 0x5ea   :  { %v1074_v48 = vmax.f32 %v1064_v46, %v1072_v40  ;;  %v1075_v52 = vmax.f32 %v1065_v47, %v1073_v45  ;;  %v1476_v49 = vpack.i.bf16 %v520_v41, %v519_v38 }
 0x5ec   :  { %1477 = vrot.lane.b32.xlu1 %v1476_v49, %s1575_s9  ;;  %1472 = vrot.lane.b32.xlu0 %v1476_v49, %s1576_s10  ;;  %v1076_v51 = vmax.f32 %v1056_v13, %v1074_v48  ;;  %v1077_v54 = vmax.f32 %v1057_v14, %v1075_v52 }
 0x5ee   :  { %v1486_v7 = vpack.i.bf16 %v1077_v54, %v1076_v51 }
 0x5f0   :  { %1487 = vrot.lane.b32.xlu1 %v1486_v7, %s1575_s9  ;;  %1482 = vrot.lane.b32.xlu0 %v1486_v7, %s1576_s10 }
 0x65e   :  { %v1478_v8 = vpop.permute.xlu1 %1477  ;;  %v1473_v3 = vpop.permute.xlu0 %1472 }
 0x65f   :  { %v1480_v55 = vunpack.i.h.bf16 %v1478_v8  ;;  %v1479_v53 = vunpack.i.l.bf16 %v1478_v8  ;;  %v1475_v56 = vunpack.i.h.bf16 %v1473_v3  ;;  %v1474_v50 = vunpack.i.l.bf16 %v1473_v3 }
 0x661   :  { %v533_v59 = vsel %vm212_vm9, %v1479_v53, %v1480_v55  ;;  %v534_v60 = vsel %vm212_vm9, %v1480_v55, %v1479_v53  ;;  %v525_v61 = vsel %vm203_vm8, %v1474_v50, %v1475_v56  ;;  %v526_v62 = vsel %vm203_vm8, %v1475_v56, %v1474_v50 }
 0x662   :  { %v535_v63 = vsel %vm61_vm10, %v534_v60, -inf  ;;  %v528_v0 = vsel %vm60_vm11, %v526_v62, -inf  ;;  %v1488_v1 = vpop.permute.xlu1 %1487  ;;  %v1483_v2 = vpop.permute.xlu0 %1482 }
 0x663   :  { %v537_v9 = vmax.f32 %v525_v61, %v535_v63  ;;  %v538_v10 = vmax.f32 %v528_v0, %v533_v59  ;;  %v1490_v11 = vunpack.i.h.bf16 %v1488_v1  ;;  %v1489_v12 = vunpack.i.l.bf16 %v1488_v1  ;;  %v1220_v61 = vld [vmem:[%s2184_s4 + $0xc] sm:$0xf] }
 0x664   :  { %v1485_v13 = vunpack.i.h.bf16 %v1483_v2  ;;  %v1484_v14 = vunpack.i.l.bf16 %v1483_v2  ;;  %v1236_v1 = vld [vmem:[%s2184_s4 + $0xc] sm:$0xf]  ;;  %s1577_s4 = smov [#allocation2]  }
 0x665   :  { %v1090_v15 = vsel %vm212_vm9, %v1489_v12, %v1490_v11  ;;  %v1091_v16 = vsel %vm212_vm9, %v1490_v11, %v1489_v12  ;;  %v539_v17 = vmax.f32 %v519_v38, %v537_v9  ;;  %v540_v18 = vmax.f32 %v520_v41, %v538_v10  ;;  %s1197_s29 = sshll.u32 %s1577_s4, 4  ;;  %s1198_s29 = int_to_ptr.vmem [resolvable:$true] %s1197_s29 }
 0x666   :  { %v1092_v19 = vsel %vm61_vm10, %v1091_v16, -inf  ;;  %v1082_v20 = vsel %vm203_vm8, %v1484_v14, %v1485_v13  ;;  %v1083_v21 = vsel %vm203_vm8, %v1485_v13, %v1484_v14  ;;  %s1548_s0 = scalar_lea.vmem %s1198_s29, 512  ;;  %p1553_p1 = scmp.lt.s32.totalorder %s1198_s29, %s1198_s29 }
 0x667   :  { %v1085_v6 = vsel %vm60_vm11, %v1083_v21, -inf  ;;  %v1094_v22 = vmax.f32 %v1082_v20, %v1092_v19  ;;  %v1496_v23 = vpack.i.bf16 %v540_v18, %v539_v17  ;;  %p1549_p0 = scmp.ne.s32.totalorder %s1198_s29, %s1548_s0  ;;  %p1554_p2 = scmp.lt.s32.totalorder %s1548_s0, %s1548_s0 }
 0x668   :  { %v1095_v24 = vmax.f32 %v1085_v6, %v1090_v15 }
 0x669   :  { %1497 = vrot.lane.b32.xlu1 %v1496_v23, %s1575_s9  ;;  %1492 = vrot.lane.b32.xlu0 %v1496_v23, %s1576_s10  ;;  %v1096_v25 = vmax.f32 %v1076_v51, %v1094_v22  ;;  %p1555_p3 = por %p1554_p2, %p1553_p1 }
 0x66a   :  { %v1097_v28 = vmax.f32 %v1077_v54, %v1095_v24 }
 0x66b   :  { %p1556_p4 = pnand %p1555_p3, %p1549_p0 }
 0x66c   :  { %v1506_v29 = vpack.i.bf16 %v1097_v28, %v1096_v25 }
 0x66e   :  { %1507 = vrot.lane.b32.xlu1 %v1506_v29, %s1575_s9  ;;  %1502 = vrot.lane.b32.xlu0 %v1506_v29, %s1576_s10 }
 0x672   :  { %619 = vperm.xlu0 %1270, %v66_v26   ;;  %626 = vperm.xlu1 %1511, %v67_v30  }
 0x6db   :  { %v1498_v27 = vpop.permute.xlu1 %1497  ;;  %v1493_v31 = vpop.permute.xlu0 %1492 }
 0x6dc   :  { %v1500_v32 = vunpack.i.h.bf16 %v1498_v27  ;;  %v1499_v33 = vunpack.i.l.bf16 %v1498_v27  ;;  %v1495_v34 = vunpack.i.h.bf16 %v1493_v31  ;;  %v1494_v35 = vunpack.i.l.bf16 %v1493_v31 }
 0x6de   :  { %v553_v36 = vsel %vm212_vm9, %v1499_v33, %v1500_v32  ;;  %v554_v37 = vsel %vm212_vm9, %v1500_v32, %v1499_v33  ;;  %v545_v38 = vsel %vm203_vm8, %v1494_v35, %v1495_v34  ;;  %v546_v41 = vsel %vm203_vm8, %v1495_v34, %v1494_v35 }
 0x6df   :  { %v555_v42 = vsel %vm61_vm10, %v554_v37, -inf  ;;  %v548_v43 = vsel %vm60_vm11, %v546_v41, -inf }
 0x6e0   :  { %v557_v44 = vmax.f32 %v545_v38, %v555_v42  ;;  %v558_v39 = vmax.f32 %v548_v43, %v553_v36  ;;  %v1508_v40 = vpop.permute.xlu1 %1507  ;;  %v1503_v45 = vpop.permute.xlu0 %1502 }
 0x6e1   :  { %v1510_v46 = vunpack.i.h.bf16 %v1508_v40  ;;  %v1509_v47 = vunpack.i.l.bf16 %v1508_v40  ;;  %v1505_v48 = vunpack.i.h.bf16 %v1503_v45  ;;  %v1504_v52 = vunpack.i.l.bf16 %v1503_v45 }
 0x6e2   :  { %v560_v49 = vmax.f32 %v540_v18, %v558_v39  ;;  %v559_v51 = vmax.f32 %v539_v17, %v557_v44 }
 0x6e3   :  { %v1110_v54 = vsel %vm212_vm9, %v1509_v47, %v1510_v46  ;;  %v1111_v7 = vsel %vm212_vm9, %v1510_v46, %v1509_v47  ;;  %v1102_v8 = vsel %vm203_vm8, %v1504_v52, %v1505_v48  ;;  %v1103_v3 = vsel %vm203_vm8, %v1505_v48, %v1504_v52 }
 0x6e4   :  { %v1112_v4 = vsel %vm61_vm10, %v1111_v7, -inf  ;;  %v1105_v55 = vsel %vm60_vm11, %v1103_v3, -inf  ;;  %v564_v53 = vpack.c.bf16 %v560_v49, %v560_v49  ;;  %v563_v56 = vpack.c.bf16 %v559_v51, %v559_v51 }
 0x6e5   :  { %v1114_v50 = vmax.f32 %v1102_v8, %v1112_v4  ;;  %v1115_v59 = vmax.f32 %v1105_v55, %v1110_v54 }
 0x6e6   :  { %1221 = vmatprep.subr.msk.bf16.mxu1 %vm78_vm0, %v564_v53  ;;  %v569_v60 = vsel %vm78_vm0, %v563_v56, 0 }
 0x6e7   :  { %575 = vmatpush1.bf16.msra.mxu1 %v569_v60  ;;  %v1117_v62 = vmax.f32 %v1097_v28, %v1115_v59  ;;  %v1116_v63 = vmax.f32 %v1096_v25, %v1114_v50 }
 0x6e9   :  { %v1120_v57 = vpack.c.bf16 %v1117_v62, %v1117_v62  ;;  %v1119_v0 = vpack.c.bf16 %v1116_v63, %v1116_v63 }
 0x6ea   :  { %1222 = vmatmul.mubr.msk.bf16.vlgmr.msra.gmra.mrb[4].mxu1 %vm74_vm1, %v1220_v61 }
 0x6eb   :  { %1237 = vmatprep.subr.msk.bf16.mxu0 %vm78_vm0, %v1120_v57  ;;  %v1125_v58 = vsel %vm78_vm0, %v1119_v0, 0 }
 0x6ec   :  { %1131 = vmatpush1.bf16.msra.mxu0 %v1125_v58 }
 0x6ef   :  { %1238 = vmatmul.mubr.msk.bf16.vlgmr.msra.gmra.mrb[4].mxu0 %vm74_vm1, %v1236_v1 }
 0x6f1   :  { %v620_v2 = vpop.permute.xlu0 %619  ;;  %v627_v9 = vpop.permute.xlu1 %626 }
 0x7bd   :  { %v608_v5 = vpop.f32.mrb[4].mxu1 }
 0x7be   :  { %v622_v10 = vmul.f32 %v620_v2, %v608_v5  ;;  %v610_v11 = vpop.f32.mrb[5].mxu1 }
 0x7bf   :  { %v623_v12 = vmul.f32 %v620_v2, %v610_v11  ;;  %v612_v13 = vpop.f32.mrb[6].mxu1 }
 0x7c0   :  { %v629_v14 = vadd.f32 %v627_v9, %v622_v10  ;;  %v613_v15 = vpop.f32.mrb[7].mxu1 }
 0x7c1   :  { %v630_v16 = vadd.f32 %v627_v9, %v623_v12 }
 0x7c2   :  { %v631_v17 = vsub.f32 0.0, %v629_v14  ;;  %v1164_v18 = vpop.f32.mrb[4].mxu0 }
 0x7c3   :  { %v632_v19 = vsub.f32 0.0, %v630_v16  ;;  %v1173_v20 = vmul.f32 %v1164_v18, %v620_v2  ;;  %v1166_v21 = vpop.f32.mrb[5].mxu0 }
 0x7c4   :  { %v633_v6 = vmul.f32 1.442695, %v631_v17  ;;  %v1174_v22 = vmul.f32 %v1166_v21, %v620_v2  ;;  %v1168_v23 = vpop.f32.mrb[6].mxu0 }
 0x7c5   :  { %v635_v24 = vmul.f32 1.442695, %v632_v19  ;;  %v1175_v25 = vadd.f32 %v1173_v20, %v627_v9  ;;  %v1169_v28 = vpop.f32.mrb[7].mxu0 }
 0x7c6   :  { %1532 = vpow2.f32 %v633_v6  ;;  %v1176_v29 = vadd.f32 %v1174_v22, %v627_v9 }
 0x7c7   :  { %1534 = vpow2.f32 %v635_v24  ;;  %v1177_v26 = vsub.f32 0.0, %v1175_v25 }
 0x7c8   :  { %v1178_v30 = vsub.f32 0.0, %v1176_v29 }
 0x7c9   :  { %v1179_v27 = vmul.f32 1.442695, %v1177_v26 }
 0x7ca   :  { %v1181_v31 = vmul.f32 1.442695, %v1178_v30 }
 0x7cb   :  { %1536 = vpow2.f32 %v1179_v27 }
 0x7cc   :  { %1538 = vpow2.f32 %v1181_v31 }
 0x7d0   :  { %v1533_v32 = vpop.eup %1532 }
 0x7d1   :  { %v1535_v33 = vpop.eup %1534  ;;  %v637_v34 = vadd.f32 1.0, %v1533_v32 }
 0x7d2   :  { %v638_v35 = vadd.f32 1.0, %v1535_v33 }
 0x7d3   :  { %1540 = vrcp.f32 %v637_v34 }
 0x7d4   :  { %1542 = vrcp.f32 %v638_v35 }
 0x7d5   :  { %v1537_v36 = vpop.eup %1536 }
 0x7d6   :  { %v1539_v37 = vpop.eup %1538  ;;  %v1183_v38 = vadd.f32 1.0, %v1537_v36 }
 0x7d7   :  { %v1184_v41 = vadd.f32 1.0, %v1539_v37 }
 0x7d8   :  { %1544 = vrcp.f32 %v1183_v38 }
 0x7d9   :  { %1546 = vrcp.f32 %v1184_v41 }
 0x7dd   :  { %v1541_v42 = vpop.eup %1540 }
 0x7de   :  { %v1543_v43 = vpop.eup %1542  ;;  %v641_v44 = vmul.f32 %v1541_v42, %v629_v14 }
 0x7df   :  { %v642_v39 = vmul.f32 %v1543_v43, %v630_v16 }
 0x7e0   :  { %643 = vst [vmem:[#allocation2] sm:$0xff] %v641_v44 }
 0x7e1   :  { %644 = vst [vmem:[#allocation2 + $0x8] sm:$0xff] %v642_v39 }
 0x7e2   :  { %v1545_v40 = vpop.eup %1544 }
 0x7e3   :  { %v1547_v45 = vpop.eup %1546  ;;  %v1187_v46 = vmul.f32 %v1545_v40, %v1175_v25 }
 0x7e4   :  { %v1188_v47 = vmul.f32 %v1547_v45, %v1176_v29 }
 0x7e5   :  { %1190 = vst [vmem:[#allocation2 + $0x10] sm:$0xff] %v1187_v46 }
 0x7e6   :  { %1191 = vst [vmem:[#allocation2 + $0x18] sm:$0xff] %v1188_v47 }
 0x7e7   :  { %1559 = shalt.err (!%p1556_p4)
}
 0x7e8   :  { %s1560_s2 = scalar_lea.hbm %s2187_s7, 512 }
 0x7e9   :  { %p1561_p5 = scmp.ne.s32.totalorder %s2187_s7, %s1560_s2  ;;  %p1564_p6 = scmp.lt.u32.totalorder %s1560_s2, %s2187_s7 }
 0x7eb   :  { %p1566_p7 = pnand %p1564_p6, %p1561_p5 }
 0x7ed   :  { %1569 = shalt.err (!%p1566_p7)
}
 0x7ee   :  { %s1578_s12 = smov 256  }
 0x7ef   :  { %1203 = dma.vmem_to_hbm [thread:$0]  %s1198_s29, 512, %s2187_s7, [#allocation3], %s1578_s12, %s1578_s12, %s1575_s9  }
 0x7f0   :  { %1570 = dma.done.wait [#allocation3], 512  }
 0x7f1   :  { %1571 = vsyncadd [#allocation3], 4294966784 }
 0x7f2   :  { %1207 = vsyncpa [#allocation3], 1 }

</bundles_post_ra>
